<compile_context>
chip_gen: v7x
topology: tpu7x:2x2x1
jax: 0.10.0
libtpu: 0.0.40
codegen_flags: <defaults>
</compile_context>

<pallas_src>
import jax
import jax.numpy as jnp
from jax.experimental import pallas as pl
from jax.experimental.pallas import tpu as pltpu

LN_EPS = 1e-5
LANE = 128          # uniform padded feature width (lane-dense, one matmul shape)
Z_PAD = LANE        # HARD CONSTRAINT: must stay a multiple of 128 so the
                    # mu/logvar split of the fused head lands on a lane-tile
                    # boundary (otherwise a cross-lane relayout copy appears).
MAX_BATCH_TILE = 256  # rows per grid step (feeds the 256-wide MXU at scale)


def _round_up(n, m):
    return ((n + m - 1) // m) * m


# ----------------------------- fused kernel ---------------------------------

def make_fused_vae_kernel(enc_in_dims, dec_in_dims, z_pad):
    """Build the fused VAE forward kernel.

    enc_in_dims / dec_in_dims: valid (unpadded) in_features of each Unit, used
    to compute exact LayerNorm statistics over the zero-padded activations.
    LN affine is already folded into (w, b), so padded lanes of the normalized
    activation are multiplied by the zero padded rows of w and contribute 0.
    """
    n_enc = len(enc_in_dims)
    n_dec = len(dec_in_dims)

    def unit(h, w, b, din_valid):
        # LayerNorm stats over the valid features only (padded lanes of h are 0).
        inv_n = 1.0 / float(din_valid)
        mean = jnp.sum(h, axis=-1, keepdims=True) * inv_n
        col = jax.lax.broadcasted_iota(jnp.int32, (1, h.shape[-1]), 1)
        diff = jnp.where(col < din_valid, h - mean, 0.0)        # two-pass, masked
        var = jnp.sum(diff * diff, axis=-1, keepdims=True) * inv_n
        xn = diff * jax.lax.rsqrt(var + LN_EPS)                  # f32
        # Affine already folded into w/b; cast only at the MXU input.
        y = jnp.dot(xn.astype(w.dtype), w,
                    preferred_element_type=jnp.float32) + b
        return jnp.maximum(y, 0.0)
        # TODO(synk): nn.Dropout(0.5) training-mode masking omitted (eval-mode identity).

    def kernel(*refs):
        it = iter(refs)
        x_ref = next(it)
        eps_ref = next(it)
        enc = [(next(it), next(it)) for _ in range(n_enc)]       # (w, b) per Unit
        head_w_ref = next(it)
        head_b_ref = next(it)
        dec = [(next(it), next(it)) for _ in range(n_dec)]
        recon_ref = next(it)
        mu_ref = next(it)
        lv_ref = next(it)

        x = x_ref[...]

        # encoder
        h = x
        for i in range(n_enc):
            w, b = enc[i]
            h = unit(h, w[...], b[...], enc_in_dims[i])

        # fused fc_z_mu / fc_z_logvar: one [H_pad, 2*Z_pad] matmul, static
        # lane-tile-aligned split (z_pad is a multiple of 128).
        head_w = head_w_ref[...]
        y = jnp.dot(h.astype(head_w.dtype), head_w,
                    preferred_element_type=jnp.float32) + head_b_ref[...]
        mu = y[:, :z_pad]
        lv = y[:, z_pad:]
        # reparameterize (eps / head padded lanes are zero -> z padded lanes are zero)
        z = mu + eps_ref[...] * jnp.exp(0.5 * lv)

        # decoder
        n = z
        for i in range(n_dec):
            w, b = dec[i]
            n = unit(n, w[...], b[...], dec_in_dims[i])

        recon_ref[...] = x + n
        mu_ref[...] = mu
        lv_ref[...] = lv

    return kernel


# ------------------------- parameter construction ---------------------------

def _pad2(a, rows, cols):
    out = jnp.zeros((rows, cols), jnp.float32)
    return out.at[: a.shape[0], : a.shape[1]].set(a)


def _init_unit(key, din, dout, pad, w_dtype=jnp.bfloat16):
    k1, k2 = jax.random.split(key)
    bound = 1.0 / (din ** 0.5)
    w = jax.random.uniform(k1, (dout, din), jnp.float32, -bound, bound)   # torch [out, in]
    b = jax.random.uniform(k2, (dout,), jnp.float32, -bound, bound)
    gamma = jnp.ones((din,), jnp.float32)      # nn.LayerNorm default affine
    beta = jnp.zeros((din,), jnp.float32)
    # Fold LN affine into the GEMM:  (xn*gamma + beta) @ W.T + b
    #   = xn @ (diag(gamma) @ W.T) + (beta @ W.T + b)
    w_folded = gamma[:, None] * w.T            # [in, out], pre-transposed
    b_folded = beta @ w.T + b                  # [out]
    return dict(
        w=_pad2(w_folded, pad, pad).astype(w_dtype),   # bf16, padded rows/cols are 0
        b=_pad2(b_folded[None, :], 1, pad),            # f32
        w_raw=w, b_raw=b, gamma=gamma, beta=beta, din=din, dout=dout,
    )


def _init_head(key, hin, z, pad, z_pad, w_dtype=jnp.bfloat16):
    k1, k2, k3, k4 = jax.random.split(key, 4)
    bound = 1.0 / (hin ** 0.5)
    wmu = jax.random.uniform(k1, (z, hin), jnp.float32, -bound, bound)
    bmu = jax.random.uniform(k2, (z,), jnp.float32, -bound, bound)
    wlv = jax.random.uniform(k3, (z, hin), jnp.float32, -bound, bound)
    blv = jax.random.uniform(k4, (z,), jnp.float32, -bound, bound)
    w = jnp.zeros((pad, 2 * z_pad), jnp.float32)
    w = w.at[:hin, :z].set(wmu.T).at[:hin, z_pad:z_pad + z].set(wlv.T)
    b = jnp.zeros((1, 2 * z_pad), jnp.float32)
    b = b.at[0, :z].set(bmu).at[0, z_pad:z_pad + z].set(blv)
    return dict(w=w.astype(w_dtype), b=b, wmu=wmu, bmu=bmu, wlv=wlv, blv=blv)


def build_augment_network_params(key, feature_dim, n_modality, z_dim, n_layer=4):
    d = feature_dim * n_modality
    step = int((d - z_dim) / (n_layer + 1))
    hidden = list(range(d - step, z_dim + step, -step))

    enc_dims = [d] + hidden
    dec_dims = [d] + hidden + [z_dim]

    n_enc = len(enc_dims) - 1
    n_dec = len(dec_dims) - 1
    keys = jax.random.split(key, n_enc + n_dec + 1)
    ki = iter(range(len(keys)))

    encoder = [_init_unit(keys[next(ki)], enc_dims[i], enc_dims[i + 1], LANE)
               for i in range(n_enc)]
    head = _init_head(keys[next(ki)], hidden[-1], z_dim, LANE, Z_PAD)
    decoder = [_init_unit(keys[next(ki)], dec_dims[i], dec_dims[i - 1], LANE)
               for i in range(len(dec_dims) - 1, 0, -1)]

    return dict(encoder=encoder, head=head, decoder=decoder,
                d=d, z_dim=z_dim, hidden=hidden)


# ------------------------------- forward ------------------------------------

def augment_network_forward(params, x, eps):
    """Returns (recon_x, z_mu, z_logvar) like AugmentNetwork.forward."""
    d, z = params['d'], params['z_dim']
    enc, dec, head = params['encoder'], params['decoder'], params['head']
    B = x.shape[0]

    # batch tiling: multiple of 8 rows (f32 sublane), capped at MAX_BATCH_TILE
    bm = min(MAX_BATCH_TILE, _round_up(B, 8))
    b_pad = _round_up(B, bm)
    grid = (b_pad // bm,)

    # zero-pad activations to the uniform lane width / padded batch
    x_p = jnp.zeros((b_pad, LANE), jnp.float32).at[:B, :d].set(x.astype(jnp.float32))
    eps_p = jnp.zeros((b_pad, LANE), jnp.float32).at[:B, :z].set(eps.astype(jnp.float32))

    # weights/biases: constant block index -> stay VMEM-resident across tiles
    weight_args, weight_specs = [], []

    def add_w(arr):
        weight_args.append(arr)
        weight_specs.append(pl.BlockSpec(arr.shape, lambda i: (0, 0)))

    for u in enc:
        add_w(u['w']); add_w(u['b'])
    add_w(head['w']); add_w(head['b'])
    for u in dec:
        add_w(u['w']); add_w(u['b'])

    act_spec = pl.BlockSpec((bm, LANE), lambda i: (i, 0))

    kernel = make_fused_vae_kernel(tuple(u['din'] for u in enc),
                                   tuple(u['din'] for u in dec), Z_PAD)

    n_mat = len(enc) + len(dec)
    flops = 2 * b_pad * (n_mat * LANE * LANE + LANE * 2 * Z_PAD)
    bytes_accessed = (sum(int(a.size) * a.dtype.itemsize for a in weight_args)
                      + 4 * b_pad * LANE * (2 + 3))
    transcendentals = b_pad * (n_mat + LANE)   # rsqrt per layer + exp on logvar lanes

    recon_p, mu_p, lv_p = pl.pallas_call(
        kernel,
        grid=grid,
        in_specs=[act_spec, act_spec] + weight_specs,
        out_specs=(act_spec, act_spec, act_spec),
        out_shape=(jax.ShapeDtypeStruct((b_pad, LANE), jnp.float32),
                   jax.ShapeDtypeStruct((b_pad, LANE), jnp.float32),
                   jax.ShapeDtypeStruct((b_pad, LANE), jnp.float32)),
        compiler_params=pltpu.CompilerParams(
            dimension_semantics=("parallel",)),
        cost_estimate=pl.CostEstimate(flops=flops,
                                      transcendentals=transcendentals,
                                      bytes_accessed=bytes_accessed),
    )(x_p, eps_p, *weight_args)

    return recon_p[:B, :d], mu_p[:B, :z], lv_p[:B, :z]


# --------------------------- pure-JAX reference ------------------------------

def reference_forward(params, x, eps):
    """f32, unpadded, un-folded reference of the PyTorch module semantics."""
    def unit_ref(h, u):
        mean = jnp.mean(h, axis=-1, keepdims=True)
        var = jnp.mean((h - mean) ** 2, axis=-1, keepdims=True)
        xn = (h - mean) / jnp.sqrt(var + LN_EPS)
        xn = xn * u['gamma'] + u['beta']
        return jnp.maximum(xn @ u['w_raw'].T + u['b_raw'], 0.0)

    h = x
    for u in params['encoder']:
        h = unit_ref(h, u)
    hd = params['head']
    mu = h @ hd['wmu'].T + hd['bmu']
    lv = h @ hd['wlv'].T + hd['blv']
    z = mu + eps * jnp.exp(0.5 * lv)
    n = z
    for u in params['decoder']:
        n = unit_ref(n, u)
    return x + n, mu, lv


if __name__ == "__main__":
    # AugmentNetwork(feature_dim=16, n_modality=2, z_dim=8, n_layer=4)
    feature_dim, n_modality, z_dim, n_layer = 16, 2, 8, 4
    batch = 8

    key = jax.random.PRNGKey(0)
    kp, kx, ke = jax.random.split(key, 3)

    params = build_augment_network_params(kp, feature_dim, n_modality, z_dim, n_layer)
    d = params['d']  # 32

    x = jax.random.normal(kx, (batch, d), jnp.float32)
    # eps corresponds to torch.randn_like(std) in reparameterize; supplied externally.
    eps = jax.random.normal(ke, (batch, z_dim), jnp.float32)

    recon_x, z_mu, z_logvar = augment_network_forward(params, x, eps)
    jax.block_until_ready((recon_x, z_mu, z_logvar))

    assert recon_x.shape == (batch, d)
    assert z_mu.shape == (batch, z_dim)
    assert z_logvar.shape == (batch, z_dim)

    # numerical check against the f32 reference; kernel uses bf16 matmul inputs
    # (f32 accumulate), so agreement is ~1e-2 rather than f32-exact.
    r_ref, mu_ref, lv_ref = reference_forward(params, x, eps)
    assert bool(jnp.allclose(recon_x, r_ref, rtol=2e-2, atol=2e-2))
    assert bool(jnp.allclose(z_mu, mu_ref, rtol=2e-2, atol=2e-2))
    assert bool(jnp.allclose(z_logvar, lv_ref, rtol=2e-2, atol=2e-2))

    print("KERNEL_OK")
</pallas_src>

<mosaic_0001>
module attributes {stable_mosaic.version = 11 : i64} {
  func.func @kernel(%arg0: i32, %arg1: memref<8x128xf32, #tpu.memory_space<vmem>>, %arg2: memref<8x128xf32, #tpu.memory_space<vmem>>, %arg3: memref<128x128xbf16, #tpu.memory_space<vmem>>, %arg4: memref<1x128xf32, #tpu.memory_space<vmem>>, %arg5: memref<128x128xbf16, #tpu.memory_space<vmem>>, %arg6: memref<1x128xf32, #tpu.memory_space<vmem>>, %arg7: memref<128x128xbf16, #tpu.memory_space<vmem>>, %arg8: memref<1x128xf32, #tpu.memory_space<vmem>>, %arg9: memref<128x128xbf16, #tpu.memory_space<vmem>>, %arg10: memref<1x128xf32, #tpu.memory_space<vmem>>, %arg11: memref<128x256xbf16, #tpu.memory_space<vmem>>, %arg12: memref<1x256xf32, #tpu.memory_space<vmem>>, %arg13: memref<128x128xbf16, #tpu.memory_space<vmem>>, %arg14: memref<1x128xf32, #tpu.memory_space<vmem>>, %arg15: memref<128x128xbf16, #tpu.memory_space<vmem>>, %arg16: memref<1x128xf32, #tpu.memory_space<vmem>>, %arg17: memref<128x128xbf16, #tpu.memory_space<vmem>>, %arg18: memref<1x128xf32, #tpu.memory_space<vmem>>, %arg19: memref<128x128xbf16, #tpu.memory_space<vmem>>, %arg20: memref<1x128xf32, #tpu.memory_space<vmem>>, %arg21: memref<128x128xbf16, #tpu.memory_space<vmem>>, %arg22: memref<1x128xf32, #tpu.memory_space<vmem>>, %arg23: memref<8x128xf32, #tpu.memory_space<vmem>>, %arg24: memref<8x128xf32, #tpu.memory_space<vmem>>, %arg25: memref<8x128xf32, #tpu.memory_space<vmem>>) attributes {dimension_semantics = [#tpu.dimension_semantics<parallel>], iteration_bounds = array<i64: 1>, scalar_prefetch = 0 : i64, scratch_operands = 0 : i64, tpu.core_type = #tpu.core_type<tc>, window_params = [{transform_indices = @transform_0, window_bounds = array<i64: 8, 128>}, {transform_indices = @transform_1, window_bounds = array<i64: 8, 128>}, {pipeline_mode = #tpu.pipeline_mode<synchronous>, transform_indices = @transform_2, window_bounds = array<i64: 128, 128>}, {pipeline_mode = #tpu.pipeline_mode<synchronous>, transform_indices = @transform_3, window_bounds = array<i64: 1, 128>}, {pipeline_mode = #tpu.pipeline_mode<synchronous>, transform_indices = @transform_4, window_bounds = array<i64: 128, 128>}, {pipeline_mode = #tpu.pipeline_mode<synchronous>, transform_indices = @transform_5, window_bounds = array<i64: 1, 128>}, {pipeline_mode = #tpu.pipeline_mode<synchronous>, transform_indices = @transform_6, window_bounds = array<i64: 128, 128>}, {pipeline_mode = #tpu.pipeline_mode<synchronous>, transform_indices = @transform_7, window_bounds = array<i64: 1, 128>}, {pipeline_mode = #tpu.pipeline_mode<synchronous>, transform_indices = @transform_8, window_bounds = array<i64: 128, 128>}, {pipeline_mode = #tpu.pipeline_mode<synchronous>, transform_indices = @transform_9, window_bounds = array<i64: 1, 128>}, {pipeline_mode = #tpu.pipeline_mode<synchronous>, transform_indices = @transform_10, window_bounds = array<i64: 128, 256>}, {pipeline_mode = #tpu.pipeline_mode<synchronous>, transform_indices = @transform_11, window_bounds = array<i64: 1, 256>}, {pipeline_mode = #tpu.pipeline_mode<synchronous>, transform_indices = @transform_12, window_bounds = array<i64: 128, 128>}, {pipeline_mode = #tpu.pipeline_mode<synchronous>, transform_indices = @transform_13, window_bounds = array<i64: 1, 128>}, {pipeline_mode = #tpu.pipeline_mode<synchronous>, transform_indices = @transform_14, window_bounds = array<i64: 128, 128>}, {pipeline_mode = #tpu.pipeline_mode<synchronous>, transform_indices = @transform_15, window_bounds = array<i64: 1, 128>}, {pipeline_mode = #tpu.pipeline_mode<synchronous>, transform_indices = @transform_16, window_bounds = array<i64: 128, 128>}, {pipeline_mode = #tpu.pipeline_mode<synchronous>, transform_indices = @transform_17, window_bounds = array<i64: 1, 128>}, {pipeline_mode = #tpu.pipeline_mode<synchronous>, transform_indices = @transform_18, window_bounds = array<i64: 128, 128>}, {pipeline_mode = #tpu.pipeline_mode<synchronous>, transform_indices = @transform_19, window_bounds = array<i64: 1, 128>}, {pipeline_mode = #tpu.pipeline_mode<synchronous>, transform_indices = @transform_20, window_bounds = array<i64: 128, 128>}, {pipeline_mode = #tpu.pipeline_mode<synchronous>, transform_indices = @transform_21, window_bounds = array<i64: 1, 128>}, {transform_indices = @transform_22, window_bounds = array<i64: 8, 128>}, {transform_indices = @transform_23, window_bounds = array<i64: 8, 128>}, {transform_indices = @transform_24, window_bounds = array<i64: 8, 128>}]} {
    %c0 = arith.constant 0 : index
    %c0_0 = arith.constant 0 : index
    %0 = vector.load %arg1[%c0, %c0_0] : memref<8x128xf32, #tpu.memory_space<vmem>>, vector<8x128xf32>
    %c0_1 = arith.constant 0 : index
    %c0_2 = arith.constant 0 : index
    %1 = vector.load %arg3[%c0_1, %c0_2] : memref<128x128xbf16, #tpu.memory_space<vmem>>, vector<128x128xbf16>
    %c0_3 = arith.constant 0 : index
    %c0_4 = arith.constant 0 : index
    %2 = vector.load %arg4[%c0_3, %c0_4] : memref<1x128xf32, #tpu.memory_space<vmem>>, vector<1x128xf32>
    %cst = arith.constant dense<0.000000e+00> : vector<8xf32>
    %3 = vector.multi_reduction <add>, %0, %cst [1] : vector<8x128xf32> to vector<8xf32>
    %4 = vector.shape_cast %3 : vector<8xf32> to vector<8x1xf32>
    %cst_5 = arith.constant 3.125000e-02 : f32
    %5 = vector.broadcast %cst_5 : f32 to vector<8x1xf32>
    %6 = arith.mulf %4, %5 : vector<8x1xf32>
    %7 = tpu.iota {dimensions = array<i32: 1>} : vector<1x128xi32>
    %c32_i32 = arith.constant 32 : i32
    %8 = vector.broadcast %c32_i32 : i32 to vector<1x128xi32>
    %9 = arith.cmpi slt, %7, %8 : vector<1x128xi32>
    %10 = vector.broadcast %6 : vector<8x1xf32> to vector<8x128xf32>
    %11 = arith.subf %0, %10 : vector<8x128xf32>
    %cst_6 = arith.constant 0.000000e+00 : f32
    %12 = vector.shape_cast %9 : vector<1x128xi1> to vector<1x128xi1>
    %13 = vector.broadcast %12 : vector<1x128xi1> to vector<8x128xi1>
    %14 = vector.broadcast %cst_6 : f32 to vector<8x128xf32>
    %15 = arith.select %13, %11, %14 : vector<8x128xi1>, vector<8x128xf32>
    %16 = arith.mulf %15, %15 : vector<8x128xf32>
    %cst_7 = arith.constant dense<0.000000e+00> : vector<8xf32>
    %17 = vector.multi_reduction <add>, %16, %cst_7 [1] : vector<8x128xf32> to vector<8xf32>
    %18 = vector.shape_cast %17 : vector<8xf32> to vector<8x1xf32>
    %cst_8 = arith.constant 3.125000e-02 : f32
    %19 = vector.broadcast %cst_8 : f32 to vector<8x1xf32>
    %20 = arith.mulf %18, %19 : vector<8x1xf32>
    %cst_9 = arith.constant 9.99999974E-6 : f32
    %21 = vector.broadcast %cst_9 : f32 to vector<8x1xf32>
    %22 = arith.addf %20, %21 : vector<8x1xf32>
    %23 = math.rsqrt %22 : vector<8x1xf32>
    %24 = vector.broadcast %23 : vector<8x1xf32> to vector<8x128xf32>
    %25 = arith.mulf %15, %24 : vector<8x128xf32>
    %26 = arith.truncf %25 : vector<8x128xf32> to vector<8x128xbf16>
    %cst_10 = arith.constant dense<0.000000e+00> : vector<8x128xf32>
    %27 = tpu.matmul %26, %1, %cst_10 {dimension_numbers = #tpu.dot_dimension_numbers<[1], [0], [0], [1], [0, 0, 1, 1], [], []>} : vector<8x128xbf16>, vector<128x128xbf16>, vector<8x128xf32> -> vector<8x128xf32>
    %28 = vector.broadcast %2 : vector<1x128xf32> to vector<8x128xf32>
    %29 = arith.addf %27, %28 : vector<8x128xf32>
    %cst_11 = arith.constant 0.000000e+00 : f32
    %30 = vector.broadcast %cst_11 : f32 to vector<8x128xf32>
    %31 = arith.maximumf %29, %30 : vector<8x128xf32>
    %c0_12 = arith.constant 0 : index
    %c0_13 = arith.constant 0 : index
    %32 = vector.load %arg5[%c0_12, %c0_13] : memref<128x128xbf16, #tpu.memory_space<vmem>>, vector<128x128xbf16>
    %c0_14 = arith.constant 0 : index
    %c0_15 = arith.constant 0 : index
    %33 = vector.load %arg6[%c0_14, %c0_15] : memref<1x128xf32, #tpu.memory_space<vmem>>, vector<1x128xf32>
    %cst_16 = arith.constant dense<0.000000e+00> : vector<8xf32>
    %34 = vector.multi_reduction <add>, %31, %cst_16 [1] : vector<8x128xf32> to vector<8xf32>
    %35 = vector.shape_cast %34 : vector<8xf32> to vector<8x1xf32>
    %cst_17 = arith.constant 0.0357142873 : f32
    %36 = vector.broadcast %cst_17 : f32 to vector<8x1xf32>
    %37 = arith.mulf %35, %36 : vector<8x1xf32>
    %38 = tpu.iota {dimensions = array<i32: 1>} : vector<1x128xi32>
    %c28_i32 = arith.constant 28 : i32
    %39 = vector.broadcast %c28_i32 : i32 to vector<1x128xi32>
    %40 = arith.cmpi slt, %38, %39 : vector<1x128xi32>
    %41 = vector.broadcast %37 : vector<8x1xf32> to vector<8x128xf32>
    %42 = arith.subf %31, %41 : vector<8x128xf32>
    %cst_18 = arith.constant 0.000000e+00 : f32
    %43 = vector.shape_cast %40 : vector<1x128xi1> to vector<1x128xi1>
    %44 = vector.broadcast %43 : vector<1x128xi1> to vector<8x128xi1>
    %45 = vector.broadcast %cst_18 : f32 to vector<8x128xf32>
    %46 = arith.select %44, %42, %45 : vector<8x128xi1>, vector<8x128xf32>
    %47 = arith.mulf %46, %46 : vector<8x128xf32>
    %cst_19 = arith.constant dense<0.000000e+00> : vector<8xf32>
    %48 = vector.multi_reduction <add>, %47, %cst_19 [1] : vector<8x128xf32> to vector<8xf32>
    %49 = vector.shape_cast %48 : vector<8xf32> to vector<8x1xf32>
    %cst_20 = arith.constant 0.0357142873 : f32
    %50 = vector.broadcast %cst_20 : f32 to vector<8x1xf32>
    %51 = arith.mulf %49, %50 : vector<8x1xf32>
    %cst_21 = arith.constant 9.99999974E-6 : f32
    %52 = vector.broadcast %cst_21 : f32 to vector<8x1xf32>
    %53 = arith.addf %51, %52 : vector<8x1xf32>
    %54 = math.rsqrt %53 : vector<8x1xf32>
    %55 = vector.broadcast %54 : vector<8x1xf32> to vector<8x128xf32>
    %56 = arith.mulf %46, %55 : vector<8x128xf32>
    %57 = arith.truncf %56 : vector<8x128xf32> to vector<8x128xbf16>
    %cst_22 = arith.constant dense<0.000000e+00> : vector<8x128xf32>
    %58 = tpu.matmul %57, %32, %cst_22 {dimension_numbers = #tpu.dot_dimension_numbers<[1], [0], [0], [1], [0, 0, 1, 1], [], []>} : vector<8x128xbf16>, vector<128x128xbf16>, vector<8x128xf32> -> vector<8x128xf32>
    %59 = vector.broadcast %33 : vector<1x128xf32> to vector<8x128xf32>
    %60 = arith.addf %58, %59 : vector<8x128xf32>
    %cst_23 = arith.constant 0.000000e+00 : f32
    %61 = vector.broadcast %cst_23 : f32 to vector<8x128xf32>
    %62 = arith.maximumf %60, %61 : vector<8x128xf32>
    %c0_24 = arith.constant 0 : index
    %c0_25 = arith.constant 0 : index
    %63 = vector.load %arg7[%c0_24, %c0_25] : memref<128x128xbf16, #tpu.memory_space<vmem>>, vector<128x128xbf16>
    %c0_26 = arith.constant 0 : index
    %c0_27 = arith.constant 0 : index
    %64 = vector.load %arg8[%c0_26, %c0_27] : memref<1x128xf32, #tpu.memory_space<vmem>>, vector<1x128xf32>
    %cst_28 = arith.constant dense<0.000000e+00> : vector<8xf32>
    %65 = vector.multi_reduction <add>, %62, %cst_28 [1] : vector<8x128xf32> to vector<8xf32>
    %66 = vector.shape_cast %65 : vector<8xf32> to vector<8x1xf32>
    %cst_29 = arith.constant 0.0416666679 : f32
    %67 = vector.broadcast %cst_29 : f32 to vector<8x1xf32>
    %68 = arith.mulf %66, %67 : vector<8x1xf32>
    %69 = tpu.iota {dimensions = array<i32: 1>} : vector<1x128xi32>
    %c24_i32 = arith.constant 24 : i32
    %70 = vector.broadcast %c24_i32 : i32 to vector<1x128xi32>
    %71 = arith.cmpi slt, %69, %70 : vector<1x128xi32>
    %72 = vector.broadcast %68 : vector<8x1xf32> to vector<8x128xf32>
    %73 = arith.subf %62, %72 : vector<8x128xf32>
    %cst_30 = arith.constant 0.000000e+00 : f32
    %74 = vector.shape_cast %71 : vector<1x128xi1> to vector<1x128xi1>
    %75 = vector.broadcast %74 : vector<1x128xi1> to vector<8x128xi1>
    %76 = vector.broadcast %cst_30 : f32 to vector<8x128xf32>
    %77 = arith.select %75, %73, %76 : vector<8x128xi1>, vector<8x128xf32>
    %78 = arith.mulf %77, %77 : vector<8x128xf32>
    %cst_31 = arith.constant dense<0.000000e+00> : vector<8xf32>
    %79 = vector.multi_reduction <add>, %78, %cst_31 [1] : vector<8x128xf32> to vector<8xf32>
    %80 = vector.shape_cast %79 : vector<8xf32> to vector<8x1xf32>
    %cst_32 = arith.constant 0.0416666679 : f32
    %81 = vector.broadcast %cst_32 : f32 to vector<8x1xf32>
    %82 = arith.mulf %80, %81 : vector<8x1xf32>
    %cst_33 = arith.constant 9.99999974E-6 : f32
    %83 = vector.broadcast %cst_33 : f32 to vector<8x1xf32>
    %84 = arith.addf %82, %83 : vector<8x1xf32>
    %85 = math.rsqrt %84 : vector<8x1xf32>
    %86 = vector.broadcast %85 : vector<8x1xf32> to vector<8x128xf32>
    %87 = arith.mulf %77, %86 : vector<8x128xf32>
    %88 = arith.truncf %87 : vector<8x128xf32> to vector<8x128xbf16>
    %cst_34 = arith.constant dense<0.000000e+00> : vector<8x128xf32>
    %89 = tpu.matmul %88, %63, %cst_34 {dimension_numbers = #tpu.dot_dimension_numbers<[1], [0], [0], [1], [0, 0, 1, 1], [], []>} : vector<8x128xbf16>, vector<128x128xbf16>, vector<8x128xf32> -> vector<8x128xf32>
    %90 = vector.broadcast %64 : vector<1x128xf32> to vector<8x128xf32>
    %91 = arith.addf %89, %90 : vector<8x128xf32>
    %cst_35 = arith.constant 0.000000e+00 : f32
    %92 = vector.broadcast %cst_35 : f32 to vector<8x128xf32>
    %93 = arith.maximumf %91, %92 : vector<8x128xf32>
    %c0_36 = arith.constant 0 : index
    %c0_37 = arith.constant 0 : index
    %94 = vector.load %arg9[%c0_36, %c0_37] : memref<128x128xbf16, #tpu.memory_space<vmem>>, vector<128x128xbf16>
    %c0_38 = arith.constant 0 : index
    %c0_39 = arith.constant 0 : index
    %95 = vector.load %arg10[%c0_38, %c0_39] : memref<1x128xf32, #tpu.memory_space<vmem>>, vector<1x128xf32>
    %cst_40 = arith.constant dense<0.000000e+00> : vector<8xf32>
    %96 = vector.multi_reduction <add>, %93, %cst_40 [1] : vector<8x128xf32> to vector<8xf32>
    %97 = vector.shape_cast %96 : vector<8xf32> to vector<8x1xf32>
    %cst_41 = arith.constant 5.000000e-02 : f32
    %98 = vector.broadcast %cst_41 : f32 to vector<8x1xf32>
    %99 = arith.mulf %97, %98 : vector<8x1xf32>
    %100 = tpu.iota {dimensions = array<i32: 1>} : vector<1x128xi32>
    %c20_i32 = arith.constant 20 : i32
    %101 = vector.broadcast %c20_i32 : i32 to vector<1x128xi32>
    %102 = arith.cmpi slt, %100, %101 : vector<1x128xi32>
    %103 = vector.broadcast %99 : vector<8x1xf32> to vector<8x128xf32>
    %104 = arith.subf %93, %103 : vector<8x128xf32>
    %cst_42 = arith.constant 0.000000e+00 : f32
    %105 = vector.shape_cast %102 : vector<1x128xi1> to vector<1x128xi1>
    %106 = vector.broadcast %105 : vector<1x128xi1> to vector<8x128xi1>
    %107 = vector.broadcast %cst_42 : f32 to vector<8x128xf32>
    %108 = arith.select %106, %104, %107 : vector<8x128xi1>, vector<8x128xf32>
    %109 = arith.mulf %108, %108 : vector<8x128xf32>
    %cst_43 = arith.constant dense<0.000000e+00> : vector<8xf32>
    %110 = vector.multi_reduction <add>, %109, %cst_43 [1] : vector<8x128xf32> to vector<8xf32>
    %111 = vector.shape_cast %110 : vector<8xf32> to vector<8x1xf32>
    %cst_44 = arith.constant 5.000000e-02 : f32
    %112 = vector.broadcast %cst_44 : f32 to vector<8x1xf32>
    %113 = arith.mulf %111, %112 : vector<8x1xf32>
    %cst_45 = arith.constant 9.99999974E-6 : f32
    %114 = vector.broadcast %cst_45 : f32 to vector<8x1xf32>
    %115 = arith.addf %113, %114 : vector<8x1xf32>
    %116 = math.rsqrt %115 : vector<8x1xf32>
    %117 = vector.broadcast %116 : vector<8x1xf32> to vector<8x128xf32>
    %118 = arith.mulf %108, %117 : vector<8x128xf32>
    %119 = arith.truncf %118 : vector<8x128xf32> to vector<8x128xbf16>
    %cst_46 = arith.constant dense<0.000000e+00> : vector<8x128xf32>
    %120 = tpu.matmul %119, %94, %cst_46 {dimension_numbers = #tpu.dot_dimension_numbers<[1], [0], [0], [1], [0, 0, 1, 1], [], []>} : vector<8x128xbf16>, vector<128x128xbf16>, vector<8x128xf32> -> vector<8x128xf32>
    %121 = vector.broadcast %95 : vector<1x128xf32> to vector<8x128xf32>
    %122 = arith.addf %120, %121 : vector<8x128xf32>
    %cst_47 = arith.constant 0.000000e+00 : f32
    %123 = vector.broadcast %cst_47 : f32 to vector<8x128xf32>
    %124 = arith.maximumf %122, %123 : vector<8x128xf32>
    %c0_48 = arith.constant 0 : index
    %c0_49 = arith.constant 0 : index
    %125 = vector.load %arg11[%c0_48, %c0_49] : memref<128x256xbf16, #tpu.memory_space<vmem>>, vector<128x256xbf16>
    %126 = arith.truncf %124 : vector<8x128xf32> to vector<8x128xbf16>
    %cst_50 = arith.constant dense<0.000000e+00> : vector<8x256xf32>
    %127 = tpu.matmul %126, %125, %cst_50 {dimension_numbers = #tpu.dot_dimension_numbers<[1], [0], [0], [1], [0, 0, 1, 1], [], []>} : vector<8x128xbf16>, vector<128x256xbf16>, vector<8x256xf32> -> vector<8x256xf32>
    %c0_51 = arith.constant 0 : index
    %c0_52 = arith.constant 0 : index
    %128 = vector.load %arg12[%c0_51, %c0_52] : memref<1x256xf32, #tpu.memory_space<vmem>>, vector<1x256xf32>
    %129 = vector.broadcast %128 : vector<1x256xf32> to vector<8x256xf32>
    %130 = arith.addf %127, %129 : vector<8x256xf32>
    %131 = vector.extract_strided_slice %130 {offsets = [0, 0], sizes = [8, 128], strides = [1, 1]} : vector<8x256xf32> to vector<8x128xf32>
    %132 = vector.extract_strided_slice %130 {offsets = [0, 128], sizes = [8, 128], strides = [1, 1]} : vector<8x256xf32> to vector<8x128xf32>
    %c0_53 = arith.constant 0 : index
    %c0_54 = arith.constant 0 : index
    %133 = vector.load %arg2[%c0_53, %c0_54] : memref<8x128xf32, #tpu.memory_space<vmem>>, vector<8x128xf32>
    %cst_55 = arith.constant 5.000000e-01 : f32
    %134 = vector.broadcast %cst_55 : f32 to vector<8x128xf32>
    %135 = arith.mulf %134, %132 : vector<8x128xf32>
    %136 = math.exp %135 : vector<8x128xf32>
    %137 = arith.mulf %133, %136 : vector<8x128xf32>
    %138 = arith.addf %131, %137 : vector<8x128xf32>
    %c0_56 = arith.constant 0 : index
    %c0_57 = arith.constant 0 : index
    %139 = vector.load %arg13[%c0_56, %c0_57] : memref<128x128xbf16, #tpu.memory_space<vmem>>, vector<128x128xbf16>
    %c0_58 = arith.constant 0 : index
    %c0_59 = arith.constant 0 : index
    %140 = vector.load %arg14[%c0_58, %c0_59] : memref<1x128xf32, #tpu.memory_space<vmem>>, vector<1x128xf32>
    %cst_60 = arith.constant dense<0.000000e+00> : vector<8xf32>
    %141 = vector.multi_reduction <add>, %138, %cst_60 [1] : vector<8x128xf32> to vector<8xf32>
    %142 = vector.shape_cast %141 : vector<8xf32> to vector<8x1xf32>
    %cst_61 = arith.constant 1.250000e-01 : f32
    %143 = vector.broadcast %cst_61 : f32 to vector<8x1xf32>
    %144 = arith.mulf %142, %143 : vector<8x1xf32>
    %145 = tpu.iota {dimensions = array<i32: 1>} : vector<1x128xi32>
    %c8_i32 = arith.constant 8 : i32
    %146 = vector.broadcast %c8_i32 : i32 to vector<1x128xi32>
    %147 = arith.cmpi slt, %145, %146 : vector<1x128xi32>
    %148 = vector.broadcast %144 : vector<8x1xf32> to vector<8x128xf32>
    %149 = arith.subf %138, %148 : vector<8x128xf32>
    %cst_62 = arith.constant 0.000000e+00 : f32
    %150 = vector.shape_cast %147 : vector<1x128xi1> to vector<1x128xi1>
    %151 = vector.broadcast %150 : vector<1x128xi1> to vector<8x128xi1>
    %152 = vector.broadcast %cst_62 : f32 to vector<8x128xf32>
    %153 = arith.select %151, %149, %152 : vector<8x128xi1>, vector<8x128xf32>
    %154 = arith.mulf %153, %153 : vector<8x128xf32>
    %cst_63 = arith.constant dense<0.000000e+00> : vector<8xf32>
    %155 = vector.multi_reduction <add>, %154, %cst_63 [1] : vector<8x128xf32> to vector<8xf32>
    %156 = vector.shape_cast %155 : vector<8xf32> to vector<8x1xf32>
    %cst_64 = arith.constant 1.250000e-01 : f32
    %157 = vector.broadcast %cst_64 : f32 to vector<8x1xf32>
    %158 = arith.mulf %156, %157 : vector<8x1xf32>
    %cst_65 = arith.constant 9.99999974E-6 : f32
    %159 = vector.broadcast %cst_65 : f32 to vector<8x1xf32>
    %160 = arith.addf %158, %159 : vector<8x1xf32>
    %161 = math.rsqrt %160 : vector<8x1xf32>
    %162 = vector.broadcast %161 : vector<8x1xf32> to vector<8x128xf32>
    %163 = arith.mulf %153, %162 : vector<8x128xf32>
    %164 = arith.truncf %163 : vector<8x128xf32> to vector<8x128xbf16>
    %cst_66 = arith.constant dense<0.000000e+00> : vector<8x128xf32>
    %165 = tpu.matmul %164, %139, %cst_66 {dimension_numbers = #tpu.dot_dimension_numbers<[1], [0], [0], [1], [0, 0, 1, 1], [], []>} : vector<8x128xbf16>, vector<128x128xbf16>, vector<8x128xf32> -> vector<8x128xf32>
    %166 = vector.broadcast %140 : vector<1x128xf32> to vector<8x128xf32>
    %167 = arith.addf %165, %166 : vector<8x128xf32>
    %cst_67 = arith.constant 0.000000e+00 : f32
    %168 = vector.broadcast %cst_67 : f32 to vector<8x128xf32>
    %169 = arith.maximumf %167, %168 : vector<8x128xf32>
    %c0_68 = arith.constant 0 : index
    %c0_69 = arith.constant 0 : index
    %170 = vector.load %arg15[%c0_68, %c0_69] : memref<128x128xbf16, #tpu.memory_space<vmem>>, vector<128x128xbf16>
    %c0_70 = arith.constant 0 : index
    %c0_71 = arith.constant 0 : index
    %171 = vector.load %arg16[%c0_70, %c0_71] : memref<1x128xf32, #tpu.memory_space<vmem>>, vector<1x128xf32>
    %cst_72 = arith.constant dense<0.000000e+00> : vector<8xf32>
    %172 = vector.multi_reduction <add>, %169, %cst_72 [1] : vector<8x128xf32> to vector<8xf32>
    %173 = vector.shape_cast %172 : vector<8xf32> to vector<8x1xf32>
    %cst_73 = arith.constant 6.250000e-02 : f32
    %174 = vector.broadcast %cst_73 : f32 to vector<8x1xf32>
    %175 = arith.mulf %173, %174 : vector<8x1xf32>
    %176 = tpu.iota {dimensions = array<i32: 1>} : vector<1x128xi32>
    %c16_i32 = arith.constant 16 : i32
    %177 = vector.broadcast %c16_i32 : i32 to vector<1x128xi32>
    %178 = arith.cmpi slt, %176, %177 : vector<1x128xi32>
    %179 = vector.broadcast %175 : vector<8x1xf32> to vector<8x128xf32>
    %180 = arith.subf %169, %179 : vector<8x128xf32>
    %cst_74 = arith.constant 0.000000e+00 : f32
    %181 = vector.shape_cast %178 : vector<1x128xi1> to vector<1x128xi1>
    %182 = vector.broadcast %181 : vector<1x128xi1> to vector<8x128xi1>
    %183 = vector.broadcast %cst_74 : f32 to vector<8x128xf32>
    %184 = arith.select %182, %180, %183 : vector<8x128xi1>, vector<8x128xf32>
    %185 = arith.mulf %184, %184 : vector<8x128xf32>
    %cst_75 = arith.constant dense<0.000000e+00> : vector<8xf32>
    %186 = vector.multi_reduction <add>, %185, %cst_75 [1] : vector<8x128xf32> to vector<8xf32>
    %187 = vector.shape_cast %186 : vector<8xf32> to vector<8x1xf32>
    %cst_76 = arith.constant 6.250000e-02 : f32
    %188 = vector.broadcast %cst_76 : f32 to vector<8x1xf32>
    %189 = arith.mulf %187, %188 : vector<8x1xf32>
    %cst_77 = arith.constant 9.99999974E-6 : f32
    %190 = vector.broadcast %cst_77 : f32 to vector<8x1xf32>
    %191 = arith.addf %189, %190 : vector<8x1xf32>
    %192 = math.rsqrt %191 : vector<8x1xf32>
    %193 = vector.broadcast %192 : vector<8x1xf32> to vector<8x128xf32>
    %194 = arith.mulf %184, %193 : vector<8x128xf32>
    %195 = arith.truncf %194 : vector<8x128xf32> to vector<8x128xbf16>
    %cst_78 = arith.constant dense<0.000000e+00> : vector<8x128xf32>
    %196 = tpu.matmul %195, %170, %cst_78 {dimension_numbers = #tpu.dot_dimension_numbers<[1], [0], [0], [1], [0, 0, 1, 1], [], []>} : vector<8x128xbf16>, vector<128x128xbf16>, vector<8x128xf32> -> vector<8x128xf32>
    %197 = vector.broadcast %171 : vector<1x128xf32> to vector<8x128xf32>
    %198 = arith.addf %196, %197 : vector<8x128xf32>
    %cst_79 = arith.constant 0.000000e+00 : f32
    %199 = vector.broadcast %cst_79 : f32 to vector<8x128xf32>
    %200 = arith.maximumf %198, %199 : vector<8x128xf32>
    %c0_80 = arith.constant 0 : index
    %c0_81 = arith.constant 0 : index
    %201 = vector.load %arg17[%c0_80, %c0_81] : memref<128x128xbf16, #tpu.memory_space<vmem>>, vector<128x128xbf16>
    %c0_82 = arith.constant 0 : index
    %c0_83 = arith.constant 0 : index
    %202 = vector.load %arg18[%c0_82, %c0_83] : memref<1x128xf32, #tpu.memory_space<vmem>>, vector<1x128xf32>
    %cst_84 = arith.constant dense<0.000000e+00> : vector<8xf32>
    %203 = vector.multi_reduction <add>, %200, %cst_84 [1] : vector<8x128xf32> to vector<8xf32>
    %204 = vector.shape_cast %203 : vector<8xf32> to vector<8x1xf32>
    %cst_85 = arith.constant 5.000000e-02 : f32
    %205 = vector.broadcast %cst_85 : f32 to vector<8x1xf32>
    %206 = arith.mulf %204, %205 : vector<8x1xf32>
    %207 = tpu.iota {dimensions = array<i32: 1>} : vector<1x128xi32>
    %c20_i32_86 = arith.constant 20 : i32
    %208 = vector.broadcast %c20_i32_86 : i32 to vector<1x128xi32>
    %209 = arith.cmpi slt, %207, %208 : vector<1x128xi32>
    %210 = vector.broadcast %206 : vector<8x1xf32> to vector<8x128xf32>
    %211 = arith.subf %200, %210 : vector<8x128xf32>
    %cst_87 = arith.constant 0.000000e+00 : f32
    %212 = vector.shape_cast %209 : vector<1x128xi1> to vector<1x128xi1>
    %213 = vector.broadcast %212 : vector<1x128xi1> to vector<8x128xi1>
    %214 = vector.broadcast %cst_87 : f32 to vector<8x128xf32>
    %215 = arith.select %213, %211, %214 : vector<8x128xi1>, vector<8x128xf32>
    %216 = arith.mulf %215, %215 : vector<8x128xf32>
    %cst_88 = arith.constant dense<0.000000e+00> : vector<8xf32>
    %217 = vector.multi_reduction <add>, %216, %cst_88 [1] : vector<8x128xf32> to vector<8xf32>
    %218 = vector.shape_cast %217 : vector<8xf32> to vector<8x1xf32>
    %cst_89 = arith.constant 5.000000e-02 : f32
    %219 = vector.broadcast %cst_89 : f32 to vector<8x1xf32>
    %220 = arith.mulf %218, %219 : vector<8x1xf32>
    %cst_90 = arith.constant 9.99999974E-6 : f32
    %221 = vector.broadcast %cst_90 : f32 to vector<8x1xf32>
    %222 = arith.addf %220, %221 : vector<8x1xf32>
    %223 = math.rsqrt %222 : vector<8x1xf32>
    %224 = vector.broadcast %223 : vector<8x1xf32> to vector<8x128xf32>
    %225 = arith.mulf %215, %224 : vector<8x128xf32>
    %226 = arith.truncf %225 : vector<8x128xf32> to vector<8x128xbf16>
    %cst_91 = arith.constant dense<0.000000e+00> : vector<8x128xf32>
    %227 = tpu.matmul %226, %201, %cst_91 {dimension_numbers = #tpu.dot_dimension_numbers<[1], [0], [0], [1], [0, 0, 1, 1], [], []>} : vector<8x128xbf16>, vector<128x128xbf16>, vector<8x128xf32> -> vector<8x128xf32>
    %228 = vector.broadcast %202 : vector<1x128xf32> to vector<8x128xf32>
    %229 = arith.addf %227, %228 : vector<8x128xf32>
    %cst_92 = arith.constant 0.000000e+00 : f32
    %230 = vector.broadcast %cst_92 : f32 to vector<8x128xf32>
    %231 = arith.maximumf %229, %230 : vector<8x128xf32>
    %c0_93 = arith.constant 0 : index
    %c0_94 = arith.constant 0 : index
    %232 = vector.load %arg19[%c0_93, %c0_94] : memref<128x128xbf16, #tpu.memory_space<vmem>>, vector<128x128xbf16>
    %c0_95 = arith.constant 0 : index
    %c0_96 = arith.constant 0 : index
    %233 = vector.load %arg20[%c0_95, %c0_96] : memref<1x128xf32, #tpu.memory_space<vmem>>, vector<1x128xf32>
    %cst_97 = arith.constant dense<0.000000e+00> : vector<8xf32>
    %234 = vector.multi_reduction <add>, %231, %cst_97 [1] : vector<8x128xf32> to vector<8xf32>
    %235 = vector.shape_cast %234 : vector<8xf32> to vector<8x1xf32>
    %cst_98 = arith.constant 0.0416666679 : f32
    %236 = vector.broadcast %cst_98 : f32 to vector<8x1xf32>
    %237 = arith.mulf %235, %236 : vector<8x1xf32>
    %238 = tpu.iota {dimensions = array<i32: 1>} : vector<1x128xi32>
    %c24_i32_99 = arith.constant 24 : i32
    %239 = vector.broadcast %c24_i32_99 : i32 to vector<1x128xi32>
    %240 = arith.cmpi slt, %238, %239 : vector<1x128xi32>
    %241 = vector.broadcast %237 : vector<8x1xf32> to vector<8x128xf32>
    %242 = arith.subf %231, %241 : vector<8x128xf32>
    %cst_100 = arith.constant 0.000000e+00 : f32
    %243 = vector.shape_cast %240 : vector<1x128xi1> to vector<1x128xi1>
    %244 = vector.broadcast %243 : vector<1x128xi1> to vector<8x128xi1>
    %245 = vector.broadcast %cst_100 : f32 to vector<8x128xf32>
    %246 = arith.select %244, %242, %245 : vector<8x128xi1>, vector<8x128xf32>
    %247 = arith.mulf %246, %246 : vector<8x128xf32>
    %cst_101 = arith.constant dense<0.000000e+00> : vector<8xf32>
    %248 = vector.multi_reduction <add>, %247, %cst_101 [1] : vector<8x128xf32> to vector<8xf32>
    %249 = vector.shape_cast %248 : vector<8xf32> to vector<8x1xf32>
    %cst_102 = arith.constant 0.0416666679 : f32
    %250 = vector.broadcast %cst_102 : f32 to vector<8x1xf32>
    %251 = arith.mulf %249, %250 : vector<8x1xf32>
    %cst_103 = arith.constant 9.99999974E-6 : f32
    %252 = vector.broadcast %cst_103 : f32 to vector<8x1xf32>
    %253 = arith.addf %251, %252 : vector<8x1xf32>
    %254 = math.rsqrt %253 : vector<8x1xf32>
    %255 = vector.broadcast %254 : vector<8x1xf32> to vector<8x128xf32>
    %256 = arith.mulf %246, %255 : vector<8x128xf32>
    %257 = arith.truncf %256 : vector<8x128xf32> to vector<8x128xbf16>
    %cst_104 = arith.constant dense<0.000000e+00> : vector<8x128xf32>
    %258 = tpu.matmul %257, %232, %cst_104 {dimension_numbers = #tpu.dot_dimension_numbers<[1], [0], [0], [1], [0, 0, 1, 1], [], []>} : vector<8x128xbf16>, vector<128x128xbf16>, vector<8x128xf32> -> vector<8x128xf32>
    %259 = vector.broadcast %233 : vector<1x128xf32> to vector<8x128xf32>
    %260 = arith.addf %258, %259 : vector<8x128xf32>
    %cst_105 = arith.constant 0.000000e+00 : f32
    %261 = vector.broadcast %cst_105 : f32 to vector<8x128xf32>
    %262 = arith.maximumf %260, %261 : vector<8x128xf32>
    %c0_106 = arith.constant 0 : index
    %c0_107 = arith.constant 0 : index
    %263 = vector.load %arg21[%c0_106, %c0_107] : memref<128x128xbf16, #tpu.memory_space<vmem>>, vector<128x128xbf16>
    %c0_108 = arith.constant 0 : index
    %c0_109 = arith.constant 0 : index
    %264 = vector.load %arg22[%c0_108, %c0_109] : memref<1x128xf32, #tpu.memory_space<vmem>>, vector<1x128xf32>
    %cst_110 = arith.constant dense<0.000000e+00> : vector<8xf32>
    %265 = vector.multi_reduction <add>, %262, %cst_110 [1] : vector<8x128xf32> to vector<8xf32>
    %266 = vector.shape_cast %265 : vector<8xf32> to vector<8x1xf32>
    %cst_111 = arith.constant 0.0357142873 : f32
    %267 = vector.broadcast %cst_111 : f32 to vector<8x1xf32>
    %268 = arith.mulf %266, %267 : vector<8x1xf32>
    %269 = tpu.iota {dimensions = array<i32: 1>} : vector<1x128xi32>
    %c28_i32_112 = arith.constant 28 : i32
    %270 = vector.broadcast %c28_i32_112 : i32 to vector<1x128xi32>
    %271 = arith.cmpi slt, %269, %270 : vector<1x128xi32>
    %272 = vector.broadcast %268 : vector<8x1xf32> to vector<8x128xf32>
    %273 = arith.subf %262, %272 : vector<8x128xf32>
    %cst_113 = arith.constant 0.000000e+00 : f32
    %274 = vector.shape_cast %271 : vector<1x128xi1> to vector<1x128xi1>
    %275 = vector.broadcast %274 : vector<1x128xi1> to vector<8x128xi1>
    %276 = vector.broadcast %cst_113 : f32 to vector<8x128xf32>
    %277 = arith.select %275, %273, %276 : vector<8x128xi1>, vector<8x128xf32>
    %278 = arith.mulf %277, %277 : vector<8x128xf32>
    %cst_114 = arith.constant dense<0.000000e+00> : vector<8xf32>
    %279 = vector.multi_reduction <add>, %278, %cst_114 [1] : vector<8x128xf32> to vector<8xf32>
    %280 = vector.shape_cast %279 : vector<8xf32> to vector<8x1xf32>
    %cst_115 = arith.constant 0.0357142873 : f32
    %281 = vector.broadcast %cst_115 : f32 to vector<8x1xf32>
    %282 = arith.mulf %280, %281 : vector<8x1xf32>
    %cst_116 = arith.constant 9.99999974E-6 : f32
    %283 = vector.broadcast %cst_116 : f32 to vector<8x1xf32>
    %284 = arith.addf %282, %283 : vector<8x1xf32>
    %285 = math.rsqrt %284 : vector<8x1xf32>
    %286 = vector.broadcast %285 : vector<8x1xf32> to vector<8x128xf32>
    %287 = arith.mulf %277, %286 : vector<8x128xf32>
    %288 = arith.truncf %287 : vector<8x128xf32> to vector<8x128xbf16>
    %cst_117 = arith.constant dense<0.000000e+00> : vector<8x128xf32>
    %289 = tpu.matmul %288, %263, %cst_117 {dimension_numbers = #tpu.dot_dimension_numbers<[1], [0], [0], [1], [0, 0, 1, 1], [], []>} : vector<8x128xbf16>, vector<128x128xbf16>, vector<8x128xf32> -> vector<8x128xf32>
    %290 = vector.broadcast %264 : vector<1x128xf32> to vector<8x128xf32>
    %291 = arith.addf %289, %290 : vector<8x128xf32>
    %cst_118 = arith.constant 0.000000e+00 : f32
    %292 = vector.broadcast %cst_118 : f32 to vector<8x128xf32>
    %293 = arith.maximumf %291, %292 : vector<8x128xf32>
    %294 = arith.addf %0, %293 : vector<8x128xf32>
    %c0_119 = arith.constant 0 : index
    %c0_120 = arith.constant 0 : index
    %295 = vector.load %arg23[%c0_119, %c0_120] : memref<8x128xf32, #tpu.memory_space<vmem>>, vector<8x128xf32>
    tpu.vector_store %arg23[%c0_119, %c0_120], %294 {strides = array<i32>} : memref<8x128xf32, #tpu.memory_space<vmem>>, vector<8x128xf32>,
    %c0_121 = arith.constant 0 : index
    %c0_122 = arith.constant 0 : index
    %296 = vector.load %arg24[%c0_121, %c0_122] : memref<8x128xf32, #tpu.memory_space<vmem>>, vector<8x128xf32>
    tpu.vector_store %arg24[%c0_121, %c0_122], %131 {strides = array<i32>} : memref<8x128xf32, #tpu.memory_space<vmem>>, vector<8x128xf32>,
    %c0_123 = arith.constant 0 : index
    %c0_124 = arith.constant 0 : index
    %297 = vector.load %arg25[%c0_123, %c0_124] : memref<8x128xf32, #tpu.memory_space<vmem>>, vector<8x128xf32>
    tpu.vector_store %arg25[%c0_123, %c0_124], %132 {strides = array<i32>} : memref<8x128xf32, #tpu.memory_space<vmem>>, vector<8x128xf32>,
    return
  }
  func.func @transform_0(%arg0: i32) -> (i32, i32) {
    %c0_i32 = arith.constant 0 : i32
    %c0_i32_0 = arith.constant 0 : i32
    return %arg0, %c0_i32 : i32, i32
  }
  func.func @transform_1(%arg0: i32) -> (i32, i32) {
    %c0_i32 = arith.constant 0 : i32
    %c0_i32_0 = arith.constant 0 : i32
    return %arg0, %c0_i32 : i32, i32
  }
  func.func @transform_2(%arg0: i32) -> (i32, i32) {
    %c0_i32 = arith.constant 0 : i32
    %c0_i32_0 = arith.constant 0 : i32
    %c0_i32_1 = arith.constant 0 : i32
    return %c0_i32, %c0_i32_0 : i32, i32
  }
  func.func @transform_3(%arg0: i32) -> (i32, i32) {
    %c0_i32 = arith.constant 0 : i32
    %c0_i32_0 = arith.constant 0 : i32
    %c0_i32_1 = arith.constant 0 : i32
    return %c0_i32, %c0_i32_0 : i32, i32
  }
  func.func @transform_4(%arg0: i32) -> (i32, i32) {
    %c0_i32 = arith.constant 0 : i32
    %c0_i32_0 = arith.constant 0 : i32
    %c0_i32_1 = arith.constant 0 : i32
    return %c0_i32, %c0_i32_0 : i32, i32
  }
  func.func @transform_5(%arg0: i32) -> (i32, i32) {
    %c0_i32 = arith.constant 0 : i32
    %c0_i32_0 = arith.constant 0 : i32
    %c0_i32_1 = arith.constant 0 : i32
    return %c0_i32, %c0_i32_0 : i32, i32
  }
  func.func @transform_6(%arg0: i32) -> (i32, i32) {
    %c0_i32 = arith.constant 0 : i32
    %c0_i32_0 = arith.constant 0 : i32
    %c0_i32_1 = arith.constant 0 : i32
    return %c0_i32, %c0_i32_0 : i32, i32
  }
  func.func @transform_7(%arg0: i32) -> (i32, i32) {
    %c0_i32 = arith.constant 0 : i32
    %c0_i32_0 = arith.constant 0 : i32
    %c0_i32_1 = arith.constant 0 : i32
    return %c0_i32, %c0_i32_0 : i32, i32
  }
  func.func @transform_8(%arg0: i32) -> (i32, i32) {
    %c0_i32 = arith.constant 0 : i32
    %c0_i32_0 = arith.constant 0 : i32
    %c0_i32_1 = arith.constant 0 : i32
    return %c0_i32, %c0_i32_0 : i32, i32
  }
  func.func @transform_9(%arg0: i32) -> (i32, i32) {
    %c0_i32 = arith.constant 0 : i32
    %c0_i32_0 = arith.constant 0 : i32
    %c0_i32_1 = arith.constant 0 : i32
    return %c0_i32, %c0_i32_0 : i32, i32
  }
  func.func @transform_10(%arg0: i32) -> (i32, i32) {
    %c0_i32 = arith.constant 0 : i32
    %c0_i32_0 = arith.constant 0 : i32
    %c0_i32_1 = arith.constant 0 : i32
    return %c0_i32, %c0_i32_0 : i32, i32
  }
  func.func @transform_11(%arg0: i32) -> (i32, i32) {
    %c0_i32 = arith.constant 0 : i32
    %c0_i32_0 = arith.constant 0 : i32
    %c0_i32_1 = arith.constant 0 : i32
    return %c0_i32, %c0_i32_0 : i32, i32
  }
  func.func @transform_12(%arg0: i32) -> (i32, i32) {
    %c0_i32 = arith.constant 0 : i32
    %c0_i32_0 = arith.constant 0 : i32
    %c0_i32_1 = arith.constant 0 : i32
    return %c0_i32, %c0_i32_0 : i32, i32
  }
  func.func @transform_13(%arg0: i32) -> (i32, i32) {
    %c0_i32 = arith.constant 0 : i32
    %c0_i32_0 = arith.constant 0 : i32
    %c0_i32_1 = arith.constant 0 : i32
    return %c0_i32, %c0_i32_0 : i32, i32
  }
  func.func @transform_14(%arg0: i32) -> (i32, i32) {
    %c0_i32 = arith.constant 0 : i32
    %c0_i32_0 = arith.constant 0 : i32
    %c0_i32_1 = arith.constant 0 : i32
    return %c0_i32, %c0_i32_0 : i32, i32
  }
  func.func @transform_15(%arg0: i32) -> (i32, i32) {
    %c0_i32 = arith.constant 0 : i32
    %c0_i32_0 = arith.constant 0 : i32
    %c0_i32_1 = arith.constant 0 : i32
    return %c0_i32, %c0_i32_0 : i32, i32
  }
  func.func @transform_16(%arg0: i32) -> (i32, i32) {
    %c0_i32 = arith.constant 0 : i32
    %c0_i32_0 = arith.constant 0 : i32
    %c0_i32_1 = arith.constant 0 : i32
    return %c0_i32, %c0_i32_0 : i32, i32
  }
  func.func @transform_17(%arg0: i32) -> (i32, i32) {
    %c0_i32 = arith.constant 0 : i32
    %c0_i32_0 = arith.constant 0 : i32
    %c0_i32_1 = arith.constant 0 : i32
    return %c0_i32, %c0_i32_0 : i32, i32
  }
  func.func @transform_18(%arg0: i32) -> (i32, i32) {
    %c0_i32 = arith.constant 0 : i32
    %c0_i32_0 = arith.constant 0 : i32
    %c0_i32_1 = arith.constant 0 : i32
    return %c0_i32, %c0_i32_0 : i32, i32
  }
  func.func @transform_19(%arg0: i32) -> (i32, i32) {
    %c0_i32 = arith.constant 0 : i32
    %c0_i32_0 = arith.constant 0 : i32
    %c0_i32_1 = arith.constant 0 : i32
    return %c0_i32, %c0_i32_0 : i32, i32
  }
  func.func @transform_20(%arg0: i32) -> (i32, i32) {
    %c0_i32 = arith.constant 0 : i32
    %c0_i32_0 = arith.constant 0 : i32
    %c0_i32_1 = arith.constant 0 : i32
    return %c0_i32, %c0_i32_0 : i32, i32
  }
  func.func @transform_21(%arg0: i32) -> (i32, i32) {
    %c0_i32 = arith.constant 0 : i32
    %c0_i32_0 = arith.constant 0 : i32
    %c0_i32_1 = arith.constant 0 : i32
    return %c0_i32, %c0_i32_0 : i32, i32
  }
  func.func @transform_22(%arg0: i32) -> (i32, i32) {
    %c0_i32 = arith.constant 0 : i32
    %c0_i32_0 = arith.constant 0 : i32
    return %arg0, %c0_i32 : i32, i32
  }
  func.func @transform_23(%arg0: i32) -> (i32, i32) {
    %c0_i32 = arith.constant 0 : i32
    %c0_i32_0 = arith.constant 0 : i32
    return %arg0, %c0_i32 : i32, i32
  }
  func.func @transform_24(%arg0: i32) -> (i32, i32) {
    %c0_i32 = arith.constant 0 : i32
    %c0_i32_0 = arith.constant 0 : i32
    return %arg0, %c0_i32 : i32, i32
  }
}

</mosaic_0001>

<bundles_post_ra>
// kernel: tpu_custom_call.1
= control target key start
LH: loop header
LB: loop body
LE: loop exit
PB: predicated region body
PF: predicated region fallthrough
CT: control target
= control target key end

     0   :  { %s3138_s0 = inlined_call_operand.hbm [shape: f32[8,128], index: 0, kind: input, shape index: {}]   ;;  %s3139_s1 = inlined_call_operand.hbm [shape: f32[8,128], index: 1, kind: input, shape index: {}]   ;;  %s3140_s2 = inlined_call_operand.hbm [shape: bf16[128,128], index: 2, kind: input, shape index: {}]   ;;  %s3141_s3 = inlined_call_operand.vmem [shape: f32[1,128], index: 3, kind: input, shape index: {}]   ;;  %s3142_s4 = inlined_call_operand.hbm [shape: bf16[128,128], index: 4, kind: input, shape index: {}]   ;;  %s3143_s5 = inlined_call_operand.vmem [shape: f32[1,128], index: 5, kind: input, shape index: {}]   ;;  %s3144_s6 = inlined_call_operand.hbm [shape: bf16[128,128], index: 6, kind: input, shape index: {}]   ;;  %s3145_s7 = inlined_call_operand.hbm [shape: f32[1,128], index: 7, kind: input, shape index: {}]   ;;  %s3146_s8 = inlined_call_operand.hbm [shape: bf16[128,128], index: 8, kind: input, shape index: {}]   ;;  %s3147_s9 = inlined_call_operand.hbm [shape: f32[1,128], index: 9, kind: input, shape index: {}]   ;;  %s3148_s10 = inlined_call_operand.hbm [shape: bf16[128,256], index: 10, kind: input, shape index: {}]   ;;  %s3149_s11 = inlined_call_operand.vmem [shape: f32[1,256], index: 11, kind: input, shape index: {}]   ;;  %s3150_s12 = inlined_call_operand.hbm [shape: bf16[128,128], index: 12, kind: input, shape index: {}]   ;;  %s3151_s13 = inlined_call_operand.hbm [shape: f32[1,128], index: 13, kind: input, shape index: {}]   ;;  %s3152_s14 = inlined_call_operand.hbm [shape: bf16[128,128], index: 14, kind: input, shape index: {}]   ;;  %s3153_s15 = inlined_call_operand.hbm [shape: f32[1,128], index: 15, kind: input, shape index: {}]   ;;  %s3154_s16 = inlined_call_operand.hbm [shape: bf16[128,128], index: 16, kind: input, shape index: {}]   ;;  %s3155_s17 = inlined_call_operand.hbm [shape: f32[1,128], index: 17, kind: input, shape index: {}]   ;;  %s3156_s18 = inlined_call_operand.vmem [shape: bf16[128,128], index: 18, kind: input, shape index: {}]   ;;  %s3157_s19 = inlined_call_operand.vmem [shape: f32[1,128], index: 19, kind: input, shape index: {}]   ;;  %s3158_s20 = inlined_call_operand.hbm [shape: bf16[128,128], index: 20, kind: input, shape index: {}]   ;;  %s3159_s21 = inlined_call_operand.vmem [shape: f32[1,128], index: 21, kind: input, shape index: {}]   ;;  %s3160_s22 = inlined_call_operand.hbm [shape: f32[8,128], index: 22, kind: output, shape index: {0}]   ;;  %s3161_s23 = inlined_call_operand.hbm [shape: f32[8,128], index: 23, kind: output, shape index: {1}]   ;;  %s3162_s24 = inlined_call_operand.hbm [shape: f32[8,128], index: 24, kind: output, shape index: {2}]  }
   0x1   :  { %3171 = sst [smem:[#allocation43_spill]] %s3138_s0 }
   0x2   :  { %3172 = sst [smem:[#allocation44_spill]] %s3139_s1 }
   0x3   :  { %3173 = sst [smem:[#allocation45_spill]] %s3140_s2 }
   0x4   :  { %3174 = sst [smem:[#allocation46_spill]] %s3141_s3 }
   0x5   :  { %3175 = sst [smem:[#allocation47_spill]] %s3142_s4 }
   0x6   :  { %3176 = sst [smem:[#allocation48_spill]] %s3143_s5 }
   0x7   :  { %3177 = sst [smem:[#allocation49_spill]] %s3144_s6 }
   0x8   :  { %3178 = sst [smem:[#allocation50_spill]] %s3145_s7 }
   0x9   :  { %3179 = sst [smem:[#allocation51_spill]] %s3146_s8 }
   0xa   :  { %3180 = sst [smem:[#allocation52_spill]] %s3159_s21 }
   0xb   :  { %3181 = sst [smem:[#allocation53_spill]] %s3160_s22 }
   0xc   :  { %30 = vsyncpa [#allocation3], 0 }
   0xd   :  { %31 = vsyncpa [#allocation6], 0 }
   0xe   :  { %32 = vsyncpa [#allocation9], 0 }
   0xf   :  { %33 = vsyncpa [#allocation12], 0 }
  0x10   :  { %34 = vsyncpa [#allocation15], 0 }
  0x11   :  { %35 = vsyncpa [#allocation18], 0 }
  0x12   :  { %36 = vsyncpa [#allocation21], 0 }
  0x13   :  { %37 = vsyncpa [#allocation24], 0 }
  0x14   :  { %38 = vsyncpa [#allocation27], 0 }
  0x15   :  { %39 = vsyncpa [#allocation4], 0 }
  0x16   :  { %40 = vsyncpa [#allocation30], 0  ;;  %s2577_s5 = smov [#allocation5]   ;;  %s3182_s6 = sld [smem:[#allocation44_spill]] }
  0x17   :  { %s57_s26 = sshll.u32 %s2577_s5, 4  ;;  %s58_s26 = int_to_ptr.vmem [resolvable:$true] %s57_s26 }
  0x1c   :  { %s2137_s2 = scalar_lea.hbm %s3182_s6, 128 }
  0x1d   :  { %p2138_p0 = scmp.ne.s32.totalorder %s3182_s6, %s2137_s2  ;;  %p2141_p1 = scmp.lt.u32.totalorder %s2137_s2, %s3182_s6 }
  0x1f   :  { %p2143_p2 = pnand %p2141_p1, %p2138_p0 }
  0x21   :  { %2146 = shalt.err (!%p2143_p2)
}
  0x22   :  { %s2147_s3 = scalar_lea.vmem %s58_s26, 128  ;;  %p2152_p4 = scmp.lt.s32.totalorder %s58_s26, %s58_s26 }
  0x23   :  { %p2148_p3 = scmp.ne.s32.totalorder %s58_s26, %s2147_s3  ;;  %p2153_p5 = scmp.lt.s32.totalorder %s2147_s3, %s2147_s3 }
  0x25   :  { %p2154_p6 = por %p2153_p5, %p2152_p4 }
  0x27   :  { %p2155_p7 = pnand %p2154_p6, %p2148_p3 }
  0x29   :  { %2158 = shalt.err (!%p2155_p7)
}
  0x2a   :  { %60 = dma.hbm_to_vmem [thread:$0]  %s3182_s6, 128, %s58_s26, [#allocation6]  }
  0x2b   :  { %s2578_s4 = smov [#allocation8]   ;;  %s2579_s5 = smov [#allocation11]  }
  0x2c   :  { %s80_s1 = sshll.u32 %s2578_s4, 4  ;;  %s107_s27 = sshll.u32 %s2579_s5, 4  ;;  %s81_s1 = int_to_ptr.vmem [resolvable:$true] %s80_s1  ;;  %s108_s27 = int_to_ptr.vmem [resolvable:$true] %s107_s27 }
  0x2d   :  { %s3183_s29 = sld [smem:[#allocation47_spill]] }
  0x33   :  { %s2159_s0 = scalar_lea.hbm %s3183_s29, 1024 }
  0x34   :  { %p2160_p8 = scmp.ne.s32.totalorder %s3183_s29, %s2159_s0  ;;  %p2163_p9 = scmp.lt.u32.totalorder %s2159_s0, %s3183_s29 }
  0x36   :  { %p2165_p10 = pnand %p2163_p9, %p2160_p8 }
  0x38   :  { %2168 = shalt.err (!%p2165_p10)
}
  0x39   :  { %s2169_s26 = scalar_lea.vmem %s81_s1, 1024  ;;  %p2174_p12 = scmp.lt.s32.totalorder %s81_s1, %s81_s1 }
  0x3a   :  { %p2170_p11 = scmp.ne.s32.totalorder %s81_s1, %s2169_s26  ;;  %p2175_p13 = scmp.lt.s32.totalorder %s2169_s26, %s2169_s26 }
  0x3c   :  { %p2176_p0 = por %p2175_p13, %p2174_p12 }
  0x3e   :  { %p2177_p1 = pnand %p2176_p0, %p2170_p11 }
  0x40   :  { %2180 = shalt.err (!%p2177_p1)
}
  0x41   :  { %s2580_s6 = smov 64   ;;  %s2581_s25 = smov 4  }
  0x42   :  { %86 = dma.hbm_to_vmem [thread:$0]  %s3183_s29, 1024, %s81_s1, [#allocation9], %s2580_s6, %s2580_s6, %s2581_s25  }
  0x43   :  { %s3184_s28 = sld [smem:[#allocation50_spill]] }
  0x49   :  { %s2181_s2 = scalar_lea.hbm %s3184_s28, 16 }
  0x4a   :  { %p2182_p2 = scmp.ne.s32.totalorder %s3184_s28, %s2181_s2  ;;  %p2185_p3 = scmp.lt.u32.totalorder %s2181_s2, %s3184_s28 }
  0x4c   :  { %p2187_p4 = pnand %p2185_p3, %p2182_p2 }
  0x4e   :  { %2190 = shalt.err (!%p2187_p4)
}
  0x4f   :  { %s2191_s26 = scalar_lea.vmem %s108_s27, 16  ;;  %s2195_s21 = scalar_lea.vmem %s108_s27, 32 }
  0x50   :  { %p2192_p5 = scmp.ne.s32.totalorder %s108_s27, %s2191_s26  ;;  %p2196_p6 = scmp.lt.s32.totalorder %s108_s27, %s108_s27 }
  0x51   :  { %p2197_p7 = scmp.lt.s32.totalorder %s2195_s21, %s2191_s26 }
  0x53   :  { %p2198_p8 = por %p2197_p7, %p2196_p6 }
  0x55   :  { %p2199_p9 = pnand %p2198_p8, %p2192_p5 }
  0x57   :  { %2202 = shalt.err (!%p2199_p9)
}
  0x58   :  { %110 = dma.hbm_to_vmem [thread:$0]  %s3184_s28, 16, %s108_s27, [#allocation12]  }
  0x59   :  { %s2582_s8 = smov [#allocation14]   ;;  %s2583_s22 = smov [#allocation17]  }
  0x5a   :  { %s129_s4 = sshll.u32 %s2582_s8, 4  ;;  %s152_s5 = sshll.u32 %s2583_s22, 4  ;;  %s130_s4 = int_to_ptr.vmem [resolvable:$true] %s129_s4  ;;  %s153_s5 = int_to_ptr.vmem [resolvable:$true] %s152_s5 }
  0x5b   :  { %s2203_s7 = scalar_lea.hbm %s3147_s9, 16 }
  0x5c   :  { %p2204_p10 = scmp.ne.s32.totalorder %s3147_s9, %s2203_s7  ;;  %p2207_p11 = scmp.lt.u32.totalorder %s2203_s7, %s3147_s9 }
  0x5e   :  { %p2209_p12 = pnand %p2207_p11, %p2204_p10 }
  0x60   :  { %2212 = shalt.err (!%p2209_p12)
}
  0x61   :  { %s2213_s27 = scalar_lea.vmem %s130_s4, 16  ;;  %s2217_s28 = scalar_lea.vmem %s130_s4, 32 }
  0x62   :  { %p2214_p13 = scmp.ne.s32.totalorder %s130_s4, %s2213_s27  ;;  %p2218_p0 = scmp.lt.s32.totalorder %s130_s4, %s130_s4 }
  0x63   :  { %p2219_p1 = scmp.lt.s32.totalorder %s2217_s28, %s2213_s27 }
  0x65   :  { %p2220_p2 = por %p2219_p1, %p2218_p0 }
  0x67   :  { %p2221_p3 = pnand %p2220_p2, %p2214_p13 }
  0x69   :  { %2224 = shalt.err (!%p2221_p3)
}
  0x6a   :  { %132 = dma.hbm_to_vmem [thread:$0]  %s3147_s9, 16, %s130_s4, [#allocation15]  }
  0x6b   :  { %s2225_s2 = scalar_lea.hbm %s3150_s12, 1024 }
  0x6c   :  { %p2226_p4 = scmp.ne.s32.totalorder %s3150_s12, %s2225_s2  ;;  %p2229_p5 = scmp.lt.u32.totalorder %s2225_s2, %s3150_s12 }
  0x6e   :  { %p2231_p6 = pnand %p2229_p5, %p2226_p4 }
  0x70   :  { %2234 = shalt.err (!%p2231_p6)
}
  0x71   :  { %s2235_s21 = scalar_lea.vmem %s153_s5, 1024  ;;  %p2240_p8 = scmp.lt.s32.totalorder %s153_s5, %s153_s5 }
  0x72   :  { %p2236_p7 = scmp.ne.s32.totalorder %s153_s5, %s2235_s21  ;;  %p2241_p9 = scmp.lt.s32.totalorder %s2235_s21, %s2235_s21 }
  0x74   :  { %p2242_p10 = por %p2241_p9, %p2240_p8 }
  0x76   :  { %p2243_p11 = pnand %p2242_p10, %p2236_p7 }
  0x78   :  { %2246 = shalt.err (!%p2243_p11)
}
  0x79   :  { %158 = dma.hbm_to_vmem [thread:$0]  %s3150_s12, 1024, %s153_s5, [#allocation18], %s2580_s6, %s2580_s6, %s2581_s25  }
  0x7a   :  { %s2584_s26 = smov [#allocation20]   ;;  %s2585_s28 = smov [#allocation23]  }
  0x7b   :  { %s174_s27 = sshll.u32 %s2584_s26, 4  ;;  %s196_s1 = sshll.u32 %s2585_s28, 4  ;;  %s175_s27 = int_to_ptr.vmem [resolvable:$true] %s174_s27  ;;  %s197_s1 = int_to_ptr.vmem [resolvable:$true] %s196_s1 }
  0x7c   :  { %s2247_s22 = scalar_lea.hbm %s3152_s14, 1024 }
  0x7d   :  { %p2248_p12 = scmp.ne.s32.totalorder %s3152_s14, %s2247_s22  ;;  %p2251_p13 = scmp.lt.u32.totalorder %s2247_s22, %s3152_s14 }
  0x7f   :  { %p2253_p0 = pnand %p2251_p13, %p2248_p12 }
  0x81   :  { %2256 = shalt.err (!%p2253_p0)
}
  0x82   :  { %s2257_s12 = scalar_lea.vmem %s175_s27, 1024  ;;  %p2262_p2 = scmp.lt.s32.totalorder %s175_s27, %s175_s27 }
  0x83   :  { %p2258_p1 = scmp.ne.s32.totalorder %s175_s27, %s2257_s12  ;;  %p2263_p3 = scmp.lt.s32.totalorder %s2257_s12, %s2257_s12 }
  0x85   :  { %p2264_p4 = por %p2263_p3, %p2262_p2 }
  0x87   :  { %p2265_p5 = pnand %p2264_p4, %p2258_p1 }
  0x89   :  { %2268 = shalt.err (!%p2265_p5)
}
  0x8a   :  { %180 = dma.hbm_to_vmem [thread:$0]  %s3152_s14, 1024, %s175_s27, [#allocation21], %s2580_s6, %s2580_s6, %s2581_s25  }
  0x8b   :  { %s2269_s4 = scalar_lea.hbm %s3154_s16, 1024 }
  0x8c   :  { %p2270_p6 = scmp.ne.s32.totalorder %s3154_s16, %s2269_s4  ;;  %p2273_p7 = scmp.lt.u32.totalorder %s2269_s4, %s3154_s16 }
  0x8e   :  { %p2275_p8 = pnand %p2273_p7, %p2270_p6 }
  0x90   :  { %2278 = shalt.err (!%p2275_p8)
}
  0x91   :  { %s2279_s22 = scalar_lea.vmem %s197_s1, 1024  ;;  %p2284_p10 = scmp.lt.s32.totalorder %s197_s1, %s197_s1 }
  0x92   :  { %p2280_p9 = scmp.ne.s32.totalorder %s197_s1, %s2279_s22  ;;  %p2285_p11 = scmp.lt.s32.totalorder %s2279_s22, %s2279_s22 }
  0x94   :  { %p2286_p12 = por %p2285_p11, %p2284_p10 }
  0x96   :  { %p2287_p13 = pnand %p2286_p12, %p2280_p9 }
  0x98   :  { %2290 = shalt.err (!%p2287_p13)
}
  0x99   :  { %202 = dma.hbm_to_vmem [thread:$0]  %s3154_s16, 1024, %s197_s1, [#allocation24], %s2580_s6, %s2580_s6, %s2581_s25  }
  0x9a   :  { %s2586_s2 = smov [#allocation2]   ;;  %s2587_s7 = smov [#allocation7]  }
  0x9b   :  { %s47_s0 = sshll.u32 %s2586_s2, 4  ;;  %s66_s30 = sshll.u32 %s2587_s7, 4  ;;  %s48_s0 = int_to_ptr.vmem [resolvable:$true] %s47_s0  ;;  %s67_s30 = int_to_ptr.vmem [resolvable:$true] %s66_s30 }
  0x9c   :  { %s3185_s3 = sld [smem:[#allocation43_spill]] }
  0xa2   :  { %s2291_s21 = scalar_lea.hbm %s3185_s3, 128 }
  0xa3   :  { %p2292_p0 = scmp.ne.s32.totalorder %s3185_s3, %s2291_s21  ;;  %p2295_p1 = scmp.lt.u32.totalorder %s2291_s21, %s3185_s3 }
  0xa5   :  { %p2297_p2 = pnand %p2295_p1, %p2292_p0 }
  0xa7   :  { %2300 = shalt.err (!%p2297_p2)
}
  0xa8   :  { %s2301_s16 = scalar_lea.vmem %s48_s0, 128  ;;  %p2306_p4 = scmp.lt.s32.totalorder %s48_s0, %s48_s0 }
  0xa9   :  { %p2302_p3 = scmp.ne.s32.totalorder %s48_s0, %s2301_s16  ;;  %p2307_p5 = scmp.lt.s32.totalorder %s2301_s16, %s2301_s16 }
  0xab   :  { %p2308_p6 = por %p2307_p5, %p2306_p4 }
  0xad   :  { %p2309_p7 = pnand %p2308_p6, %p2302_p3 }
  0xaf   :  { %2312 = shalt.err (!%p2309_p7)
}
  0xb0   :  { %50 = dma.hbm_to_vmem [thread:$0]  %s3185_s3, 128, %s48_s0, [#allocation3]  }
  0xb1   :  { %s3186_s14 = sld [smem:[#allocation45_spill]] }
  0xb7   :  { %s2313_s27 = scalar_lea.hbm %s3186_s14, 1024 }
  0xb8   :  { %p2314_p8 = scmp.ne.s32.totalorder %s3186_s14, %s2313_s27  ;;  %p2317_p9 = scmp.lt.u32.totalorder %s2313_s27, %s3186_s14 }
  0xba   :  { %p2319_p10 = pnand %p2317_p9, %p2314_p8 }
  0xbc   :  { %2322 = shalt.err (!%p2319_p10)
}
  0xbd   :  { %s2323_s21 = scalar_lea.vmem %s67_s30, 1024  ;;  %p2328_p12 = scmp.lt.s32.totalorder %s67_s30, %s67_s30 }
  0xbe   :  { %p2324_p11 = scmp.ne.s32.totalorder %s67_s30, %s2323_s21  ;;  %p2329_p13 = scmp.lt.s32.totalorder %s2323_s21, %s2323_s21 }
  0xc0   :  { %p2330_p0 = por %p2329_p13, %p2328_p12 }
  0xc2   :  { %p2331_p1 = pnand %p2330_p0, %p2324_p11 }
  0xc4   :  { %2334 = shalt.err (!%p2331_p1)
}
  0xc5   :  { %72 = dma.hbm_to_vmem [thread:$0]  %s3186_s14, 1024, %s67_s30, [#allocation6], %s2580_s6, %s2580_s6, %s2581_s25  }
  0xc6   :  { %s2588_s9 = smov [#allocation10]   ;;  %s2589_s26 = smov [#allocation13]  }
  0xc7   :  { %s94_s4 = sshll.u32 %s2588_s9, 4  ;;  %s116_s28 = sshll.u32 %s2589_s26, 4  ;;  %s95_s4 = int_to_ptr.vmem [resolvable:$true] %s94_s4  ;;  %s117_s28 = int_to_ptr.vmem [resolvable:$true] %s116_s28 }
  0xc8   :  { %s3187_s29 = sld [smem:[#allocation49_spill]] }
  0xce   :  { %s2335_s8 = scalar_lea.hbm %s3187_s29, 1024 }
  0xcf   :  { %p2336_p2 = scmp.ne.s32.totalorder %s3187_s29, %s2335_s8  ;;  %p2339_p3 = scmp.lt.u32.totalorder %s2335_s8, %s3187_s29 }
  0xd1   :  { %p2341_p4 = pnand %p2339_p3, %p2336_p2 }
  0xd3   :  { %2344 = shalt.err (!%p2341_p4)
}
  0xd4   :  { %s2345_s30 = scalar_lea.vmem %s95_s4, 1024  ;;  %p2350_p6 = scmp.lt.s32.totalorder %s95_s4, %s95_s4 }
  0xd5   :  { %p2346_p5 = scmp.ne.s32.totalorder %s95_s4, %s2345_s30  ;;  %p2351_p7 = scmp.lt.s32.totalorder %s2345_s30, %s2345_s30 }
  0xd7   :  { %p2352_p8 = por %p2351_p7, %p2350_p6 }
  0xd9   :  { %p2353_p9 = pnand %p2352_p8, %p2346_p5 }
  0xdb   :  { %2356 = shalt.err (!%p2353_p9)
}
  0xdc   :  { %100 = dma.hbm_to_vmem [thread:$0]  %s3187_s29, 1024, %s95_s4, [#allocation9], %s2580_s6, %s2580_s6, %s2581_s25  }
  0xdd   :  { %s3188_s0 = sld [smem:[#allocation51_spill]] }
  0xe3   :  { %s2357_s3 = scalar_lea.hbm %s3188_s0, 1024 }
  0xe4   :  { %p2358_p10 = scmp.ne.s32.totalorder %s3188_s0, %s2357_s3  ;;  %p2361_p11 = scmp.lt.u32.totalorder %s2357_s3, %s3188_s0 }
  0xe6   :  { %p2363_p12 = pnand %p2361_p11, %p2358_p10 }
  0xe8   :  { %2366 = shalt.err (!%p2363_p12)
}
  0xe9   :  { %s2367_s8 = scalar_lea.vmem %s117_s28, 1024  ;;  %p2372_p0 = scmp.lt.s32.totalorder %s117_s28, %s117_s28 }
  0xea   :  { %p2368_p13 = scmp.ne.s32.totalorder %s117_s28, %s2367_s8  ;;  %p2373_p1 = scmp.lt.s32.totalorder %s2367_s8, %s2367_s8 }
  0xec   :  { %p2374_p2 = por %p2373_p1, %p2372_p0 }
  0xee   :  { %p2375_p3 = pnand %p2374_p2, %p2368_p13 }
  0xf0   :  { %2378 = shalt.err (!%p2375_p3)
}
  0xf1   :  { %122 = dma.hbm_to_vmem [thread:$0]  %s3188_s0, 1024, %s117_s28, [#allocation12], %s2580_s6, %s2580_s6, %s2581_s25  }
  0xf2   :  { %s2590_s22 = smov [#allocation16]   ;;  %s2379_s30 = scalar_lea.hbm %s3148_s10, 2048 }
  0xf3   :  { %s138_s27 = sshll.u32 %s2590_s22, 4  ;;  %p2380_p4 = scmp.ne.s32.totalorder %s3148_s10, %s2379_s30  ;;  %s139_s27 = int_to_ptr.vmem [resolvable:$true] %s138_s27 }
  0xf4   :  { %p2383_p5 = scmp.lt.u32.totalorder %s2379_s30, %s3148_s10 }
  0xf6   :  { %p2385_p6 = pnand %p2383_p5, %p2380_p4 }
  0xf8   :  { %2388 = shalt.err (!%p2385_p6)
}
  0xf9   :  { %s2389_s3 = scalar_lea.vmem %s139_s27, 2048  ;;  %p2394_p8 = scmp.lt.s32.totalorder %s139_s27, %s139_s27 }
  0xfa   :  { %p2390_p7 = scmp.ne.s32.totalorder %s139_s27, %s2389_s3  ;;  %p2395_p9 = scmp.lt.s32.totalorder %s2389_s3, %s2389_s3 }
  0xfc   :  { %p2396_p10 = por %p2395_p9, %p2394_p8 }
  0xfe   :  { %p2397_p11 = pnand %p2396_p10, %p2390_p7 }
 0x100   :  { %2400 = shalt.err (!%p2397_p11)
}
 0x101   :  { %s2591_s28 = smov 128   ;;  %s2592_s0 = smov 8  }
 0x102   :  { %144 = dma.hbm_to_vmem [thread:$0]  %s3148_s10, 2048, %s139_s27, [#allocation15], %s2591_s28, %s2591_s28, %s2592_s0  }
 0x103   :  { %s2593_s16 = smov [#allocation19]   ;;  %s2594_s8 = smov [#allocation22]  }
 0x104   :  { %s165_s1 = sshll.u32 %s2593_s16, 4  ;;  %s187_s4 = sshll.u32 %s2594_s8, 4  ;;  %s166_s1 = int_to_ptr.vmem [resolvable:$true] %s165_s1  ;;  %s188_s4 = int_to_ptr.vmem [resolvable:$true] %s187_s4 }
 0x105   :  { %s2401_s2 = scalar_lea.hbm %s3151_s13, 16 }
 0x106   :  { %p2402_p12 = scmp.ne.s32.totalorder %s3151_s13, %s2401_s2  ;;  %p2405_p13 = scmp.lt.u32.totalorder %s2401_s2, %s3151_s13 }
 0x108   :  { %p2407_p0 = pnand %p2405_p13, %p2402_p12 }
 0x10a   :  { %2410 = shalt.err (!%p2407_p0)
}
 0x10b   :  { %s2411_s10 = scalar_lea.vmem %s166_s1, 16  ;;  %s2415_s27 = scalar_lea.vmem %s166_s1, 32 }
 0x10c   :  { %p2412_p1 = scmp.ne.s32.totalorder %s166_s1, %s2411_s10  ;;  %p2416_p2 = scmp.lt.s32.totalorder %s166_s1, %s166_s1 }
 0x10d   :  { %p2417_p3 = scmp.lt.s32.totalorder %s2415_s27, %s2411_s10 }
 0x10f   :  { %p2418_p4 = por %p2417_p3, %p2416_p2 }
 0x111   :  { %p2419_p5 = pnand %p2418_p4, %p2412_p1 }
 0x113   :  { %2422 = shalt.err (!%p2419_p5)
}
 0x114   :  { %168 = dma.hbm_to_vmem [thread:$0]  %s3151_s13, 16, %s166_s1, [#allocation18]  }
 0x115   :  { %s2423_s0 = scalar_lea.hbm %s3153_s15, 16 }
 0x116   :  { %p2424_p6 = scmp.ne.s32.totalorder %s3153_s15, %s2423_s0  ;;  %p2427_p7 = scmp.lt.u32.totalorder %s2423_s0, %s3153_s15 }
 0x118   :  { %p2429_p8 = pnand %p2427_p7, %p2424_p6 }
 0x11a   :  { %2432 = shalt.err (!%p2429_p8)
}
 0x11b   :  { %s2433_s29 = scalar_lea.vmem %s188_s4, 16  ;;  %s2437_s22 = scalar_lea.vmem %s188_s4, 32 }
 0x11c   :  { %p2434_p9 = scmp.ne.s32.totalorder %s188_s4, %s2433_s29  ;;  %p2438_p10 = scmp.lt.s32.totalorder %s188_s4, %s188_s4 }
 0x11d   :  { %p2439_p11 = scmp.lt.s32.totalorder %s2437_s22, %s2433_s29 }
 0x11f   :  { %p2440_p12 = por %p2439_p11, %p2438_p10 }
 0x121   :  { %p2441_p13 = pnand %p2440_p12, %p2434_p9 }
 0x123   :  { %2444 = shalt.err (!%p2441_p13)
}
 0x124   :  { %190 = dma.hbm_to_vmem [thread:$0]  %s3153_s15, 16, %s188_s4, [#allocation21]  }
 0x125   :  { %s2595_s2 = smov [#allocation25]   ;;  %s2596_s30 = smov [#allocation26]  }
 0x126   :  { %s209_s7 = sshll.u32 %s2595_s2, 4  ;;  %s222_s14 = sshll.u32 %s2596_s30, 4  ;;  %s210_s7 = int_to_ptr.vmem [resolvable:$true] %s209_s7  ;;  %s2917_s14 = int_to_ptr.vmem [resolvable:$true] %s222_s14 }
 0x127   :  { %s2445_s27 = scalar_lea.hbm %s3155_s17, 16 }
 0x128   :  { %p2446_p0 = scmp.ne.s32.totalorder %s3155_s17, %s2445_s27  ;;  %p2449_p1 = scmp.lt.u32.totalorder %s2445_s27, %s3155_s17 }
 0x12a   :  { %p2451_p2 = pnand %p2449_p1, %p2446_p0 }
 0x12c   :  { %2454 = shalt.err (!%p2451_p2)
}
 0x12d   :  { %s2455_s15 = scalar_lea.vmem %s210_s7, 16  ;;  %s2459_s4 = scalar_lea.vmem %s210_s7, 32 }
 0x12e   :  { %p2456_p3 = scmp.ne.s32.totalorder %s210_s7, %s2455_s15  ;;  %p2460_p4 = scmp.lt.s32.totalorder %s210_s7, %s210_s7 }
 0x12f   :  { %p2461_p5 = scmp.lt.s32.totalorder %s2459_s4, %s2455_s15 }
 0x131   :  { %p2462_p6 = por %p2461_p5, %p2460_p4 }
 0x133   :  { %p2463_p7 = pnand %p2462_p6, %p2456_p3 }
 0x135   :  { %2466 = shalt.err (!%p2463_p7)
}
 0x136   :  { %212 = dma.hbm_to_vmem [thread:$0]  %s3155_s17, 16, %s210_s7, [#allocation24]  }
 0x137   :  { %s2467_s8 = scalar_lea.hbm %s3158_s20, 1024 }
 0x138   :  { %p2468_p8 = scmp.ne.s32.totalorder %s3158_s20, %s2467_s8  ;;  %p2471_p9 = scmp.lt.u32.totalorder %s2467_s8, %s3158_s20 }
 0x13a   :  { %p2473_p10 = pnand %p2471_p9, %p2468_p8 }
 0x13c   :  { %2476 = shalt.err (!%p2473_p10)
}
 0x13d   :  { %s2477_s2 = scalar_lea.vmem %s2917_s14, 1024  ;;  %p2482_p12 = scmp.lt.s32.totalorder %s2917_s14, %s2917_s14 }
 0x13e   :  { %p2478_p11 = scmp.ne.s32.totalorder %s2917_s14, %s2477_s2  ;;  %p2483_p13 = scmp.lt.s32.totalorder %s2477_s2, %s2477_s2 }
 0x140   :  { %p2484_p0 = por %p2483_p13, %p2482_p12 }
 0x142   :  { %p2485_p1 = pnand %p2484_p0, %p2478_p11 }
 0x144   :  { %2488 = shalt.err (!%p2485_p1)
}
 0x145   :  { %228 = dma.hbm_to_vmem [thread:$0]  %s3158_s20, 1024, %s2917_s14, [#allocation27], %s2580_s6, %s2580_s6, %s2581_s25  }
 0x146   :  { %2555 = dma.done.wait [#allocation3], 128  }
 0x147   :  { %2556 = vsyncadd [#allocation3], 4294967168 }
 0x148   :  { %2557 = dma.done.wait [#allocation6], 1152  }
 0x149   :  { %2558 = vsyncadd [#allocation6], 4294966144 }
 0x14a   :  { %2559 = dma.done.wait [#allocation9], 2048  }
 0x14b   :  { %2560 = vsyncadd [#allocation9], 4294965248 }
 0x14c   :  { %2561 = dma.done.wait [#allocation12], 1040  }
 0x14d   :  { %2562 = vsyncadd [#allocation12], 4294966256 }
 0x14e   :  { %2563 = dma.done.wait [#allocation15], 2064  }
 0x14f   :  { %2564 = vsyncadd [#allocation15], 4294965232 }
 0x150   :  { %2565 = dma.done.wait [#allocation18], 1040  }
 0x151   :  { %2566 = vsyncadd [#allocation18], 4294966256 }
 0x152   :  { %2567 = dma.done.wait [#allocation21], 1040  }
 0x153   :  { %2568 = vsyncadd [#allocation21], 4294966256 }
 0x154   :  { %2569 = dma.done.wait [#allocation24], 1040  }
 0x155   :  { %2570 = vsyncadd [#allocation24], 4294966256 }
 0x156   :  { %2571 = dma.done.wait [#allocation27], 1024  }
 0x157   :  { %2572 = vsyncadd [#allocation27], 4294966272  ;;  %v280_v0 = vld [vmem:[#allocation2] sm:$0xff]  ;;  %v2020_v1 = vld [vmem:[#allocation7] sm:$0xff]   ;;  %v2597_v3 = vmov 0.0   ;;  %v301_v5 = vlaneseq  ;;  %vm2598_vm1 = vmmov 0  }
 0x158   :  { %298 = vadd.xlane.f32.xlu0 %v280_v0  ;;  %v2021_v2 = vld [vmem:[#allocation7 + $0x8] sm:$0xff]   ;;  %1814 = vmatprep.subr.bf16.mxu0 %v2597_v3  ;;  %v2022_v4 = vld [vmem:[#allocation7 + $0x10] sm:$0xff]   ;;  %v2023_v12 = vld [vmem:[#allocation7 + $0x18] sm:$0xff]   ;;  %s3189_s25 = sld [smem:[#allocation46_spill]]  ;;  %s3190_s12 = sld [smem:[#allocation48_spill]] }
 0x159   :  { %1834 = vmatprep.subr.bf16.mxu1 %v2597_v3  ;;  %1815 = vmatpush3.bf16.msra.mxu0 %v2020_v1  ;;  %v2957_v6 = vand.u32 127, %v301_v5  ;;  %v2024_v13 = vld [vmem:[#allocation7 + $0x20] sm:$0xff]   ;;  %v2025_v14 = vld [vmem:[#allocation7 + $0x28] sm:$0xff]   ;;  %v2026_v15 = vld [vmem:[#allocation7 + $0x30] sm:$0xff]  }
 0x15a   :  { %1816 = vmatprep.subr.bf16.mxu0 %v2597_v3  ;;  %1830 = vmatprep.mubr.msk.bf16.mxu0 %vm2598_vm1, %v2597_v3  ;;  %v2027_v16 = vld [vmem:[#allocation7 + $0x38] sm:$0xff]   ;;  %v2028_v30 = vld [vmem:[#allocation8] sm:$0xff]   ;;  %v2029_v31 = vld [vmem:[#allocation8 + $0x8] sm:$0xff]  }
 0x15b   :  { %vm303_vm0 = vcmp.lt.s32.totalorder %v2957_v6, 32  ;;  %1850 = vmatprep.mubr.msk.bf16.mxu1 %vm2598_vm1, %v2597_v3  ;;  %1835 = vmatpush3.bf16.msra.mxu1 %v2028_v30  ;;  %v2030_v32 = vld [vmem:[#allocation8 + $0x10] sm:$0xff]   ;;  %vm431_vm2 = vcmp.lt.s32.totalorder %v2957_v6, 28  ;;  %v2031_v38 = vld [vmem:[#allocation8 + $0x18] sm:$0xff]   ;;  %v2032_v39 = vld [vmem:[#allocation8 + $0x20] sm:$0xff]   ;;  %vm559_vm3 = vcmp.lt.s32.totalorder %v2957_v6, 24 }
 0x15c   :  { %1836 = vmatprep.subr.bf16.mxu1 %v2597_v3  ;;  %v2033_v40 = vld [vmem:[#allocation8 + $0x28] sm:$0xff]   ;;  %v2034_v41 = vld [vmem:[#allocation8 + $0x30] sm:$0xff]   ;;  %v2035_v42 = vld [vmem:[#allocation8 + $0x38] sm:$0xff]   ;;  %vm687_vm4 = vcmp.lt.s32.totalorder %v2957_v6, 20  ;;  %vm971_vm5 = vcmp.lt.s32.totalorder %v2957_v6, 8  ;;  %vm1099_vm6 = vcmp.lt.s32.totalorder %v2957_v6, 16 }
 0x15d   :  { %1817 = vmatpush3.bf16.msra.mxu0 %v2021_v2  ;;  %v2036_v56 = vld [vmem:[#allocation10] sm:$0xff]   ;;  %v2037_v57 = vld [vmem:[#allocation10 + $0x8] sm:$0xff]   ;;  %v2038_v58 = vld [vmem:[#allocation10 + $0x10] sm:$0xff]  }
 0x15e   :  { %1818 = vmatprep.subr.bf16.mxu0 %v2597_v3  ;;  %v1636_v23 = vld [vmem:[%s3189_s25] ss:$0 sm:$0xff]  ;;  %v2040_v1 = vld [vmem:[#allocation10 + $0x20] sm:$0xff]   ;;  %v2041_v2 = vld [vmem:[#allocation10 + $0x28] sm:$0xff]  }
 0x15f   :  { %1837 = vmatpush3.bf16.msra.mxu1 %v2029_v31  ;;  %v1645_v49 = vld [vmem:[%s3190_s12] ss:$0 sm:$0xff]  ;;  %v2048_v30 = vld [vmem:[#allocation13 + $0x20] sm:$0xff]  }
 0x160   :  { %1838 = vmatprep.subr.bf16.mxu1 %v2597_v3  ;;  %v2049_v31 = vld [vmem:[#allocation13 + $0x28] sm:$0xff]  }
 0x161   :  { %1819 = vmatpush3.bf16.msra.mxu0 %v2022_v4  ;;  %v2042_v4 = vld [vmem:[#allocation10 + $0x30] sm:$0xff]  }
 0x162   :  { %1820 = vmatprep.subr.bf16.mxu0 %v2597_v3 }
 0x163   :  { %1839 = vmatpush3.bf16.msra.mxu1 %v2030_v32  ;;  %v2050_v32 = vld [vmem:[#allocation13 + $0x30] sm:$0xff]  }
 0x164   :  { %1840 = vmatprep.subr.bf16.mxu1 %v2597_v3 }
 0x165   :  { %1821 = vmatpush3.bf16.msra.mxu0 %v2023_v12 }
 0x166   :  { %1822 = vmatprep.subr.bf16.mxu0 %v2597_v3 }
 0x167   :  { %1841 = vmatpush3.bf16.msra.mxu1 %v2031_v38  ;;  %v2060_v38 = vld [vmem:[#allocation16 + $0x24] ss:$8 sps:$4 sm:$0xff]  }
 0x168   :  { %1842 = vmatprep.subr.bf16.mxu1 %v2597_v3 }
 0x169   :  { %1823 = vmatpush3.bf16.msra.mxu0 %v2024_v13 }
 0x16a   :  { %1824 = vmatprep.subr.bf16.mxu0 %v2597_v3 }
 0x16b   :  { %1843 = vmatpush3.bf16.msra.mxu1 %v2032_v39  ;;  %v2058_v39 = vld [vmem:[#allocation16 + $0x20] ss:$8 sps:$4 sm:$0xff]  }
 0x16c   :  { %1844 = vmatprep.subr.bf16.mxu1 %v2597_v3 }
 0x16d   :  { %1825 = vmatpush3.bf16.msra.mxu0 %v2025_v14  ;;  %v1654_v14 = vld [vmem:[#allocation11] ss:$0 sm:$0xff] }
 0x16e   :  { %1826 = vmatprep.subr.bf16.mxu0 %v2597_v3 }
 0x16f   :  { %1845 = vmatpush3.bf16.msra.mxu1 %v2033_v40  ;;  %v2063_v40 = vld [vmem:[#allocation16 + $0x34] ss:$8 sps:$4 sm:$0xff]  }
 0x170   :  { %1846 = vmatprep.subr.bf16.mxu1 %v2597_v3 }
 0x171   :  { %1827 = vmatpush3.bf16.msra.mxu0 %v2026_v15 }
 0x172   :  { %1828 = vmatprep.subr.bf16.mxu0 %v2597_v3 }
 0x173   :  { %1847 = vmatpush3.bf16.msra.mxu1 %v2034_v41  ;;  %v2061_v41 = vld [vmem:[#allocation16 + $0x30] ss:$8 sps:$4 sm:$0xff]  }
 0x174   :  { %1848 = vmatprep.subr.bf16.mxu1 %v2597_v3 }
 0x175   :  { %1829 = vmatpush3.bf16.msra.mxu0 %v2027_v16 }
 0x176   :  { %1854 = vmatprep.subr.bf16.mxu0 %v2597_v3 }
 0x177   :  { %1849 = vmatpush3.bf16.msra.mxu1 %v2035_v42  ;;  %v2066_v42 = vld [vmem:[#allocation16 + $0x44] ss:$8 sps:$4 sm:$0xff]  }
 0x178   :  { %1874 = vmatprep.subr.bf16.mxu1 %v2597_v3 }
 0x1e5   :  { %v299_v7 = vpop.xlane.xlu0 %298 }
 0x1e6   :  { %v300_v8 = vmul.f32 0.03125, %v299_v7  ;;  %v2043_v7 = vld [vmem:[#allocation10 + $0x38] sm:$0xff]  }
 0x1e8   :  { %v304_v9 = vsub.f32 %v280_v0, %v300_v8  ;;  %v2039_v0 = vld [vmem:[#allocation10 + $0x18] sm:$0xff]  }
 0x1ea   :  { %v307_v10 = vsel %vm303_vm0, %v304_v9, 0.0 }
 0x1eb   :  { %v308_v11 = vmul.f32 %v307_v10, %v307_v10 }
 0x1ed   :  { %309 = vadd.xlane.f32.xlu0 %v308_v11 }
 0x27a   :  { %v310_v17 = vpop.xlane.xlu0 %309 }
 0x27b   :  { %v311_v18 = vmul.f32 0.03125, %v310_v17 }
 0x27d   :  { %v312_v19 = vadd.f32 1e-05, %v311_v18 }
 0x27f   :  { %2116 = vrsqrt.f32 %v312_v19 }
 0x289   :  { %v2117_v20 = vpop.eup %2116 }
 0x28a   :  { %v314_v21 = vmul.f32 %v2117_v20, %v307_v10 }
 0x28c   :  { %v315_v22 = vpack.c.bf16 %v314_v21, %v314_v21  ;;  %v2044_v21 = vld [vmem:[#allocation13] sm:$0xff]  }
 0x28e   :  { %1831 = vmatmul.mubr.bf16.vlgmr.msra.gmra.mrb[0].mxu0 %v315_v22  ;;  %v2045_v22 = vld [vmem:[#allocation13 + $0x8] sm:$0xff]  }
 0x28f   :  { %1870 = vmatprep.mubr.msk.bf16.mxu0 %vm2598_vm1, %v2597_v3  ;;  %1855 = vmatpush3.bf16.msra.mxu0 %v2036_v56  ;;  %v2599_v56 = vmov 0  }
 0x290   :  { %1856 = vmatprep.subr.bf16.mxu0 %v2597_v3 }
 0x293   :  { %1857 = vmatpush3.bf16.msra.mxu0 %v2037_v57  ;;  %v1663_v57 = vld [vmem:[#allocation14] ss:$0 sm:$0xff] }
 0x294   :  { %1858 = vmatprep.subr.bf16.mxu0 %v2597_v3 }
 0x297   :  { %1859 = vmatpush3.bf16.msra.mxu0 %v2038_v58 }
 0x298   :  { %1860 = vmatprep.subr.bf16.mxu0 %v2597_v3 }
 0x29b   :  { %1861 = vmatpush3.bf16.msra.mxu0 %v2039_v0 }
 0x29c   :  { %1862 = vmatprep.subr.bf16.mxu0 %v2597_v3 }
 0x29f   :  { %1863 = vmatpush3.bf16.msra.mxu0 %v2040_v1  ;;  %v815_v1 = vshrl.u32 %v301_v5, 7  ;;  %v945_v5 = vld [vmem:[#allocation5] sm:$0xff] }
 0x2a0   :  { %1864 = vmatprep.subr.bf16.mxu0 %v2597_v3 }
 0x2a3   :  { %1865 = vmatpush3.bf16.msra.mxu0 %v2041_v2  ;;  %v816_v2 = vsub.s32 0, %v815_v1 }
 0x2a4   :  { %1866 = vmatprep.subr.bf16.mxu0 %v2597_v3 }
 0x2a7   :  { %1867 = vmatpush3.bf16.msra.mxu0 %v2042_v4  ;;  %v812_v4 = vld [vmem:[%s3149_s11] sm:$0x3] }
 0x2a8   :  { %1868 = vmatprep.subr.bf16.mxu0 %v2597_v3 }
 0x2ab   :  { %1869 = vmatpush3.bf16.msra.mxu0 %v2043_v7  ;;  %v820_v7 = vsub.s32 1, %v815_v1 }
 0x361   :  { %v404_v24 = vpop.f32.mrb[0].mxu0 }
 0x362   :  { %v405_v25 = vadd.f32 %v1636_v23, %v404_v24  ;;  %v1832_v26 = vpop.f32.mrb[1].mxu0  ;;  %v2046_v23 = vld [vmem:[#allocation13 + $0x10] sm:$0xff]  }
 0x363   :  { %v407_v27 = vpop.f32.mrb[2].mxu0 }
 0x364   :  { %v410_v28 = vmax.f32 %v405_v25, 0.0  ;;  %v1833_v29 = vpop.f32.mrb[3].mxu0 }
 0x365   :  { %v2047_v29 = vld [vmem:[#allocation13 + $0x18] sm:$0xff]  }
 0x366   :  { %428 = vadd.xlane.f32.xlu1 %v410_v28 }
 0x3f3   :  { %v429_v33 = vpop.xlane.xlu1 %428 }
 0x3f4   :  { %v430_v34 = vmul.f32 0.035714287, %v429_v33  ;;  %v2051_v33 = vld [vmem:[#allocation13 + $0x38] sm:$0xff]  }
 0x3f6   :  { %v432_v35 = vsub.f32 %v410_v28, %v430_v34  ;;  %v2052_v34 = vld [vmem:[#allocation16] ss:$8 sps:$4 sm:$0xff]  }
 0x3f8   :  { %v435_v36 = vsel %vm431_vm2, %v432_v35, 0.0  ;;  %v2054_v35 = vld [vmem:[#allocation16 + $0x4] ss:$8 sps:$4 sm:$0xff]  }
 0x3f9   :  { %v436_v37 = vmul.f32 %v435_v36, %v435_v36  ;;  %904 = vmatprep.subr.bf16.mxu0 %v2054_v35 }
 0x3fb   :  { %437 = vadd.xlane.f32.xlu1 %v436_v37  ;;  %v2055_v37 = vld [vmem:[#allocation16 + $0x10] ss:$8 sps:$4 sm:$0xff]  }
 0x488   :  { %v438_v43 = vpop.xlane.xlu1 %437 }
 0x489   :  { %v439_v44 = vmul.f32 0.035714287, %v438_v43  ;;  %v2064_v43 = vld [vmem:[#allocation16 + $0x40] ss:$8 sps:$4 sm:$0xff]  }
 0x48b   :  { %v440_v45 = vadd.f32 1e-05, %v439_v44  ;;  %v2069_v44 = vld [vmem:[#allocation16 + $0x54] ss:$8 sps:$4 sm:$0xff]  }
 0x48d   :  { %2118 = vrsqrt.f32 %v440_v45  ;;  %v2067_v45 = vld [vmem:[#allocation16 + $0x50] ss:$8 sps:$4 sm:$0xff]  }
 0x497   :  { %v2119_v46 = vpop.eup %2118 }
 0x498   :  { %v442_v47 = vmul.f32 %v2119_v46, %v435_v36  ;;  %v2057_v36 = vld [vmem:[#allocation16 + $0x14] ss:$8 sps:$4 sm:$0xff]   ;;  %v2072_v46 = vld [vmem:[#allocation16 + $0x64] ss:$8 sps:$4 sm:$0xff]  }
 0x49a   :  { %v443_v48 = vpack.c.bf16 %v442_v47, %v442_v47  ;;  %v2070_v47 = vld [vmem:[#allocation16 + $0x60] ss:$8 sps:$4 sm:$0xff]  }
 0x49c   :  { %1851 = vmatmul.mubr.bf16.vlgmr.msra.gmra.mrb[0].mxu1 %v443_v48 }
 0x49d   :  { %1890 = vmatprep.mubr.msk.bf16.mxu1 %vm2598_vm1, %v2597_v3  ;;  %1875 = vmatpush3.bf16.msra.mxu1 %v2044_v21  ;;  %v2076_v21 = vld [vmem:[#allocation17] sm:$0xff]  }
 0x49e   :  { %1876 = vmatprep.subr.bf16.mxu1 %v2597_v3 }
 0x4a1   :  { %1877 = vmatpush3.bf16.msra.mxu1 %v2045_v22  ;;  %v2077_v22 = vld [vmem:[#allocation17 + $0x8] sm:$0xff]  }
 0x4a2   :  { %1878 = vmatprep.subr.bf16.mxu1 %v2597_v3 }
 0x4a5   :  { %1879 = vmatpush3.bf16.msra.mxu1 %v2046_v23  ;;  %v2078_v23 = vld [vmem:[#allocation17 + $0x10] sm:$0xff]  }
 0x4a6   :  { %1880 = vmatprep.subr.bf16.mxu1 %v2597_v3 }
 0x4a9   :  { %1881 = vmatpush3.bf16.msra.mxu1 %v2047_v29  ;;  %v2079_v29 = vld [vmem:[#allocation17 + $0x18] sm:$0xff]  }
 0x4aa   :  { %1882 = vmatprep.subr.bf16.mxu1 %v2597_v3 }
 0x4ad   :  { %1883 = vmatpush3.bf16.msra.mxu1 %v2048_v30  ;;  %v2080_v30 = vld [vmem:[#allocation17 + $0x20] sm:$0xff]  }
 0x4ae   :  { %1884 = vmatprep.subr.bf16.mxu1 %v2597_v3 }
 0x4b1   :  { %1885 = vmatpush3.bf16.msra.mxu1 %v2049_v31  ;;  %v2081_v31 = vld [vmem:[#allocation17 + $0x28] sm:$0xff]  }
 0x4b2   :  { %1886 = vmatprep.subr.bf16.mxu1 %v2597_v3 }
 0x4b5   :  { %1887 = vmatpush3.bf16.msra.mxu1 %v2050_v32  ;;  %v2082_v32 = vld [vmem:[#allocation17 + $0x30] sm:$0xff]  }
 0x4b6   :  { %1888 = vmatprep.subr.bf16.mxu1 %v2597_v3 }
 0x4b9   :  { %1889 = vmatpush3.bf16.msra.mxu1 %v2051_v33  ;;  %v2083_v33 = vld [vmem:[#allocation17 + $0x38] sm:$0xff]  }
 0x4ba   :  { %1894 = vmatprep.subr.bf16.mxu1 %v2597_v3 }
 0x56f   :  { %v532_v50 = vpop.f32.mrb[0].mxu1 }
 0x570   :  { %v533_v51 = vadd.f32 %v1645_v49, %v532_v50  ;;  %v1852_v52 = vpop.f32.mrb[1].mxu1 }
 0x571   :  { %v535_v53 = vpop.f32.mrb[2].mxu1 }
 0x572   :  { %v538_v54 = vmax.f32 %v533_v51, 0.0  ;;  %v1853_v55 = vpop.f32.mrb[3].mxu1 }
 0x573   :  { %v2073_v55 = vld [vmem:[#allocation16 + $0x70] ss:$8 sps:$4 sm:$0xff]  }
 0x574   :  { %556 = vadd.xlane.f32.xlu0 %v538_v54 }
 0x601   :  { %v557_v59 = vpop.xlane.xlu0 %556 }
 0x602   :  { %v558_v60 = vmul.f32 0.041666668, %v557_v59 }
 0x604   :  { %v560_v61 = vsub.f32 %v538_v54, %v558_v60  ;;  %v2075_v54 = vld [vmem:[#allocation16 + $0x74] ss:$8 sps:$4 sm:$0xff]  }
 0x606   :  { %v563_v62 = vsel %vm559_vm3, %v560_v61, 0.0 }
 0x607   :  { %v564_v63 = vmul.f32 %v563_v62, %v563_v62 }
 0x609   :  { %565 = vadd.xlane.f32.xlu1 %v564_v63 }
 0x696   :  { %v566_v8 = vpop.xlane.xlu1 %565 }
 0x697   :  { %v567_v9 = vmul.f32 0.041666668, %v566_v8  ;;  %v817_v8 = vrot.slane %v812_v4, %v816_v2  ;;  %v1697_v2 = vld [vmem:[#allocation22] ss:$0 sm:$0xff] }
 0x699   :  { %v568_v10 = vadd.f32 1e-05, %v567_v9  ;;  %v821_v9 = vrot.slane %v812_v4, %v820_v7 }
 0x69b   :  { %2120 = vrsqrt.f32 %v568_v10 }
 0x6a5   :  { %v2121_v11 = vpop.eup %2120 }
 0x6a6   :  { %v570_v12 = vmul.f32 %v2121_v11, %v563_v62 }
 0x6a8   :  { %v571_v13 = vpack.c.bf16 %v570_v12, %v570_v12 }
 0x6aa   :  { %1871 = vmatmul.mubr.bf16.vlgmr.msra.gmra.mrb[4].mxu0 %v571_v13 }
 0x6ab   :  { %905 = vmatpush1.bf16.msra.mxu0 %v2052_v34  ;;  %936 = vmatprep.mubr.bf16.mxu0 %v2599_v56  ;;  %v2088_v56 = vld [vmem:[#allocation20 + $0x20] sm:$0xff]  }
 0x6ac   :  { %906 = vmatprep.subr.bf16.mxu0 %v2057_v36 }
 0x6af   :  { %907 = vmatpush1.bf16.msra.mxu0 %v2055_v37 }
 0x6b0   :  { %908 = vmatprep.subr.bf16.mxu0 %v2060_v38 }
 0x6b3   :  { %909 = vmatpush1.bf16.msra.mxu0 %v2058_v39 }
 0x6b4   :  { %910 = vmatprep.subr.bf16.mxu0 %v2063_v40  ;;  %v1688_v40 = vld [vmem:[#allocation19] ss:$0 sm:$0xff] }
 0x6b7   :  { %911 = vmatpush1.bf16.msra.mxu0 %v2061_v41 }
 0x6b8   :  { %912 = vmatprep.subr.bf16.mxu0 %v2066_v42 }
 0x6bb   :  { %913 = vmatpush1.bf16.msra.mxu0 %v2064_v43 }
 0x6bc   :  { %914 = vmatprep.subr.bf16.mxu0 %v2069_v44 }
 0x6bf   :  { %915 = vmatpush1.bf16.msra.mxu0 %v2067_v45 }
 0x6c0   :  { %916 = vmatprep.subr.bf16.mxu0 %v2072_v46 }
 0x6c3   :  { %917 = vmatpush1.bf16.msra.mxu0 %v2070_v47  ;;  %v2084_v47 = vld [vmem:[#allocation20] sm:$0xff]  }
 0x6c4   :  { %918 = vmatprep.subr.bf16.mxu0 %v2075_v54 }
 0x6c7   :  { %919 = vmatpush1.bf16.msra.mxu0 %v2073_v55  ;;  %v2087_v55 = vld [vmem:[#allocation20 + $0x18] sm:$0xff]  }
 0x6c8   :  { %1914 = vmatprep.subr.bf16.mxu0 %v2597_v3 }
 0x77d   :  { %v660_v15 = vpop.f32.mrb[4].mxu0 }
 0x77e   :  { %v661_v16 = vadd.f32 %v1654_v14, %v660_v15  ;;  %v1872_v17 = vpop.f32.mrb[5].mxu0 }
 0x77f   :  { %v663_v18 = vpop.f32.mrb[6].mxu0 }
 0x780   :  { %v666_v19 = vmax.f32 %v661_v16, 0.0  ;;  %v1873_v20 = vpop.f32.mrb[7].mxu0 }
 0x782   :  { %684 = vadd.xlane.f32.xlu0 %v666_v19 }
 0x80f   :  { %v685_v24 = vpop.xlane.xlu0 %684 }
 0x810   :  { %v686_v25 = vmul.f32 0.05, %v685_v24 }
 0x812   :  { %v688_v26 = vsub.f32 %v666_v19, %v686_v25 }
 0x814   :  { %v691_v27 = vsel %vm687_vm4, %v688_v26, 0.0 }
 0x815   :  { %v692_v28 = vmul.f32 %v691_v27, %v691_v27 }
 0x817   :  { %693 = vadd.xlane.f32.xlu1 %v692_v28 }
 0x8a4   :  { %v694_v48 = vpop.xlane.xlu1 %693 }
 0x8a5   :  { %v695_v49 = vmul.f32 0.05, %v694_v48  ;;  %v2085_v48 = vld [vmem:[#allocation20 + $0x8] sm:$0xff]  }
 0x8a7   :  { %v696_v50 = vadd.f32 1e-05, %v695_v49  ;;  %v2086_v49 = vld [vmem:[#allocation20 + $0x10] sm:$0xff]  }
 0x8a9   :  { %2122 = vrsqrt.f32 %v696_v50 }
 0x8b3   :  { %v2123_v51 = vpop.eup %2122 }
 0x8b4   :  { %v698_v52 = vmul.f32 %v2123_v51, %v691_v27 }
 0x8b6   :  { %v699_v53 = vpack.c.bf16 %v698_v52, %v698_v52 }
 0x8b8   :  { %1891 = vmatmul.mubr.bf16.vlgmr.msra.gmra.mrb[4].mxu1 %v699_v53 }
 0x8b9   :  { %1910 = vmatprep.mubr.msk.bf16.mxu1 %vm2598_vm1, %v2597_v3  ;;  %1895 = vmatpush3.bf16.msra.mxu1 %v2076_v21  ;;  %v2097_v21 = vld [vmem:[#allocation23 + $0x28] sm:$0xff]  }
 0x8ba   :  { %1896 = vmatprep.subr.bf16.mxu1 %v2597_v3 }
 0x8bd   :  { %1897 = vmatpush3.bf16.msra.mxu1 %v2077_v22  ;;  %v2098_v22 = vld [vmem:[#allocation23 + $0x30] sm:$0xff]  }
 0x8be   :  { %1898 = vmatprep.subr.bf16.mxu1 %v2597_v3 }
 0x8c1   :  { %1899 = vmatpush3.bf16.msra.mxu1 %v2078_v23  ;;  %v2099_v23 = vld [vmem:[#allocation23 + $0x38] sm:$0xff]  }
 0x8c2   :  { %1900 = vmatprep.subr.bf16.mxu1 %v2597_v3 }
 0x8c5   :  { %1901 = vmatpush3.bf16.msra.mxu1 %v2079_v29 }
 0x8c6   :  { %1902 = vmatprep.subr.bf16.mxu1 %v2597_v3 }
 0x8c9   :  { %1903 = vmatpush3.bf16.msra.mxu1 %v2080_v30  ;;  %v1706_v30 = vld [vmem:[#allocation25] ss:$0 sm:$0xff] }
 0x8ca   :  { %1904 = vmatprep.subr.bf16.mxu1 %v2597_v3 }
 0x8cd   :  { %1905 = vmatpush3.bf16.msra.mxu1 %v2081_v31 }
 0x8ce   :  { %1906 = vmatprep.subr.bf16.mxu1 %v2597_v3 }
 0x8d1   :  { %1907 = vmatpush3.bf16.msra.mxu1 %v2082_v32 }
 0x8d2   :  { %1908 = vmatprep.subr.bf16.mxu1 %v2597_v3 }
 0x8d5   :  { %1909 = vmatpush3.bf16.msra.mxu1 %v2083_v33 }
 0x8d6   :  { %1934 = vmatprep.subr.bf16.mxu1 %v2597_v3 }
 0x98b   :  { %v788_v58 = vpop.f32.mrb[4].mxu1 }
 0x98c   :  { %v789_v59 = vadd.f32 %v1663_v57, %v788_v58  ;;  %v1892_v60 = vpop.f32.mrb[5].mxu1  ;;  %v2089_v57 = vld [vmem:[#allocation20 + $0x28] sm:$0xff]   ;;  %v2090_v58 = vld [vmem:[#allocation20 + $0x30] sm:$0xff]  }
 0x98d   :  { %v791_v61 = vpop.f32.mrb[6].mxu1 }
 0x98e   :  { %v794_v62 = vmax.f32 %v789_v59, 0.0  ;;  %v1893_v63 = vpop.f32.mrb[7].mxu1  ;;  %v2091_v59 = vld [vmem:[#allocation20 + $0x38] sm:$0xff]  }
 0x990   :  { %v811_v0 = vpack.c.bf16 %v794_v62, %v794_v62 }
 0x992   :  { %937 = vmatmul.mubr.bf16.vlgmr.msra.gmra.mrb[8].mxu0 %v811_v0 }
 0x993   :  { %1930 = vmatprep.mubr.msk.bf16.mxu0 %vm2598_vm1, %v2597_v3  ;;  %1915 = vmatpush3.bf16.msra.mxu0 %v2084_v47  ;;  %v2105_v47 = vld [vmem:[%s3156_s18 + $0x28] sm:$0xff]  }
 0x994   :  { %1916 = vmatprep.subr.bf16.mxu0 %v2597_v3 }
 0x997   :  { %1917 = vmatpush3.bf16.msra.mxu0 %v2085_v48  ;;  %v2106_v48 = vld [vmem:[%s3156_s18 + $0x30] sm:$0xff]  }
 0x998   :  { %1918 = vmatprep.subr.bf16.mxu0 %v2597_v3 }
 0x99b   :  { %1919 = vmatpush3.bf16.msra.mxu0 %v2086_v49  ;;  %v2107_v49 = vld [vmem:[%s3156_s18 + $0x38] sm:$0xff]  }
 0x99c   :  { %1920 = vmatprep.subr.bf16.mxu0 %v2597_v3 }
 0x99f   :  { %1921 = vmatpush3.bf16.msra.mxu0 %v2087_v55 }
 0x9a0   :  { %1922 = vmatprep.subr.bf16.mxu0 %v2597_v3 }
 0x9a3   :  { %1923 = vmatpush3.bf16.msra.mxu0 %v2088_v56  ;;  %v1715_v56 = vld [vmem:[%s3157_s19] ss:$0 sm:$0xff] }
 0x9a4   :  { %1924 = vmatprep.subr.bf16.mxu0 %v2597_v3 }
 0x9a7   :  { %1925 = vmatpush3.bf16.msra.mxu0 %v2089_v57 }
 0x9a8   :  { %1926 = vmatprep.subr.bf16.mxu0 %v2597_v3 }
 0x9ab   :  { %1927 = vmatpush3.bf16.msra.mxu0 %v2090_v58 }
 0x9ac   :  { %1928 = vmatprep.subr.bf16.mxu0 %v2597_v3 }
 0x9af   :  { %1929 = vmatpush3.bf16.msra.mxu0 %v2091_v59 }
 0x9b0   :  { %1954 = vmatprep.subr.bf16.mxu0 %v2597_v3 }
 0xa65   :  { %v938_v10 = vpop.f32.mrb[8].mxu0 }
 0xa66   :  { %v939_v11 = vadd.f32 %v938_v10, %v817_v8  ;;  %v940_v12 = vpop.f32.mrb[9].mxu0 }
 0xa67   :  { %v941_v13 = vadd.f32 %v940_v12, %v821_v9  ;;  %v942_v14 = vpop.f32.mrb[10].mxu0  ;;  %v2092_v12 = vld [vmem:[#allocation23] sm:$0xff]  }
 0xa68   :  { %1584 = vst [vmem:[#allocation29] sm:$0xff] %v939_v11  ;;  %v943_v15 = vpop.f32.mrb[11].mxu0  ;;  %v2094_v14 = vld [vmem:[#allocation23 + $0x10] sm:$0xff]  }
 0xa69   :  { %v946_v16 = vmul.f32 0.5, %v941_v13  ;;  %1585 = vst [vmem:[#allocation31] sm:$0xff] %v941_v13  ;;  %v2093_v13 = vld [vmem:[#allocation23 + $0x8] sm:$0xff]  }
 0xa6b   :  { %v947_v17 = vmul.f32 1.442695, %v946_v16 }
 0xa6d   :  { %2124 = vpow2.f32 %v947_v17 }
 0xa77   :  { %v2125_v18 = vpop.eup %2124 }
 0xa78   :  { %v949_v19 = vmul.f32 %v2125_v18, %v945_v5 }
 0xa7a   :  { %v950_v20 = vadd.f32 %v949_v19, %v939_v11  ;;  %v2095_v19 = vld [vmem:[#allocation23 + $0x18] sm:$0xff]  }
 0xa7c   :  { %968 = vadd.xlane.f32.xlu0 %v950_v20 }
 0xb09   :  { %v969_v24 = vpop.xlane.xlu0 %968 }
 0xb0a   :  { %v970_v25 = vmul.f32 0.125, %v969_v24 }
 0xb0c   :  { %v972_v26 = vsub.f32 %v950_v20, %v970_v25  ;;  %v2096_v20 = vld [vmem:[#allocation23 + $0x20] sm:$0xff]  }
 0xb0e   :  { %v975_v27 = vsel %vm971_vm5, %v972_v26, 0.0 }
 0xb0f   :  { %v976_v28 = vmul.f32 %v975_v27, %v975_v27 }
 0xb11   :  { %977 = vadd.xlane.f32.xlu1 %v976_v28 }
 0xb9e   :  { %v978_v34 = vpop.xlane.xlu1 %977 }
 0xb9f   :  { %v979_v35 = vmul.f32 0.125, %v978_v34 }
 0xba1   :  { %v980_v36 = vadd.f32 1e-05, %v979_v35 }
 0xba3   :  { %2126 = vrsqrt.f32 %v980_v36 }
 0xbad   :  { %v2127_v37 = vpop.eup %2126 }
 0xbae   :  { %v982_v38 = vmul.f32 %v2127_v37, %v975_v27  ;;  %v2100_v37 = vld [vmem:[%s3156_s18] sm:$0xff]  }
 0xbb0   :  { %v983_v39 = vpack.c.bf16 %v982_v38, %v982_v38  ;;  %v2101_v38 = vld [vmem:[%s3156_s18 + $0x8] sm:$0xff]  }
 0xbb2   :  { %1911 = vmatmul.mubr.bf16.vlgmr.msra.gmra.mrb[8].mxu1 %v983_v39  ;;  %v2102_v39 = vld [vmem:[%s3156_s18 + $0x10] sm:$0xff]  }
 0xbb3   :  { %1950 = vmatprep.mubr.msk.bf16.mxu1 %vm2598_vm1, %v2597_v3  ;;  %1935 = vmatpush3.bf16.msra.mxu1 %v2092_v12  ;;  %v2113_v12 = vld [vmem:[#allocation26 + $0x28] sm:$0xff]  }
 0xbb4   :  { %1936 = vmatprep.subr.bf16.mxu1 %v2597_v3 }
 0xbb7   :  { %1937 = vmatpush3.bf16.msra.mxu1 %v2093_v13  ;;  %v2114_v13 = vld [vmem:[#allocation26 + $0x30] sm:$0xff]  }
 0xbb8   :  { %1938 = vmatprep.subr.bf16.mxu1 %v2597_v3 }
 0xbbb   :  { %1939 = vmatpush3.bf16.msra.mxu1 %v2094_v14  ;;  %v2115_v14 = vld [vmem:[#allocation26 + $0x38] sm:$0xff]  }
 0xbbc   :  { %1940 = vmatprep.subr.bf16.mxu1 %v2597_v3 }
 0xbbf   :  { %1941 = vmatpush3.bf16.msra.mxu1 %v2095_v19 }
 0xbc0   :  { %1942 = vmatprep.subr.bf16.mxu1 %v2597_v3 }
 0xbc3   :  { %1943 = vmatpush3.bf16.msra.mxu1 %v2096_v20 }
 0xbc4   :  { %1944 = vmatprep.subr.bf16.mxu1 %v2597_v3 }
 0xbc7   :  { %1945 = vmatpush3.bf16.msra.mxu1 %v2097_v21 }
 0xbc8   :  { %1946 = vmatprep.subr.bf16.mxu1 %v2597_v3 }
 0xbcb   :  { %1947 = vmatpush3.bf16.msra.mxu1 %v2098_v22 }
 0xbcc   :  { %1948 = vmatprep.subr.bf16.mxu1 %v2597_v3 }
 0xbcf   :  { %1949 = vmatpush3.bf16.msra.mxu1 %v2099_v23 }
 0xbd0   :  { %1974 = vmatprep.subr.bf16.mxu1 %v2597_v3 }
 0xc85   :  { %v1072_v41 = vpop.f32.mrb[8].mxu1 }
 0xc86   :  { %v1073_v42 = vadd.f32 %v1688_v40, %v1072_v41  ;;  %v1912_v43 = vpop.f32.mrb[9].mxu1 }
 0xc87   :  { %v1075_v44 = vpop.f32.mrb[10].mxu1 }
 0xc88   :  { %v1078_v45 = vmax.f32 %v1073_v42, 0.0  ;;  %v1913_v46 = vpop.f32.mrb[11].mxu1 }
 0xc89   :  { %v2104_v46 = vld [vmem:[%s3156_s18 + $0x20] sm:$0xff]  }
 0xc8a   :  { %1096 = vadd.xlane.f32.xlu0 %v1078_v45 }
 0xd17   :  { %v1097_v50 = vpop.xlane.xlu0 %1096 }
 0xd18   :  { %v1098_v51 = vmul.f32 0.0625, %v1097_v50 }
 0xd1a   :  { %v1100_v52 = vsub.f32 %v1078_v45, %v1098_v51  ;;  %v2103_v45 = vld [vmem:[%s3156_s18 + $0x18] sm:$0xff]   ;;  %s2600_s18 = smov [#allocation29]  }
 0xd1b   :  { %s1602_s19 = sshll.u32 %s2600_s18, 4  ;;  %s1603_s19 = int_to_ptr.vmem [resolvable:$true] %s1602_s19 }
 0xd1c   :  { %v1103_v53 = vsel %vm1099_vm6, %v1100_v52, 0.0  ;;  %s2489_s7 = scalar_lea.vmem %s1603_s19, 128  ;;  %p2494_p3 = scmp.lt.s32.totalorder %s1603_s19, %s1603_s19 }
 0xd1d   :  { %v1104_v54 = vmul.f32 %v1103_v53, %v1103_v53  ;;  %p2490_p2 = scmp.ne.s32.totalorder %s1603_s19, %s2489_s7  ;;  %p2495_p4 = scmp.lt.s32.totalorder %s2489_s7, %s2489_s7 }
 0xd1f   :  { %1105 = vadd.xlane.f32.xlu1 %v1104_v54  ;;  %p2496_p5 = por %p2495_p4, %p2494_p3 }
 0xd21   :  { %p2497_p6 = pnand %p2496_p5, %p2490_p2 }
 0xdac   :  { %v1106_v60 = vpop.xlane.xlu1 %1105 }
 0xdad   :  { %v1107_v61 = vmul.f32 0.0625, %v1106_v60 }
 0xdaf   :  { %v1108_v62 = vadd.f32 1e-05, %v1107_v61 }
 0xdb1   :  { %2128 = vrsqrt.f32 %v1108_v62 }
 0xdbb   :  { %v2129_v63 = vpop.eup %2128 }
 0xdbc   :  { %v1110_v0 = vmul.f32 %v2129_v63, %v1103_v53  ;;  %v2108_v63 = vld [vmem:[#allocation26] sm:$0xff]  }
 0xdbe   :  { %v1111_v1 = vpack.c.bf16 %v1110_v0, %v1110_v0  ;;  %v2109_v0 = vld [vmem:[#allocation26 + $0x8] sm:$0xff]  }
 0xdc0   :  { %1931 = vmatmul.mubr.bf16.vlgmr.msra.gmra.mrb[12].mxu0 %v1111_v1  ;;  %v2110_v1 = vld [vmem:[#allocation26 + $0x10] sm:$0xff]  }
 0xdc1   :  { %1970 = vmatprep.mubr.msk.bf16.mxu0 %vm2598_vm1, %v2597_v3  ;;  %1955 = vmatpush3.bf16.msra.mxu0 %v2100_v37 }
 0xdc2   :  { %1956 = vmatprep.subr.bf16.mxu0 %v2597_v3 }
 0xdc5   :  { %1957 = vmatpush3.bf16.msra.mxu0 %v2101_v38 }
 0xdc6   :  { %1958 = vmatprep.subr.bf16.mxu0 %v2597_v3 }
 0xdc9   :  { %1959 = vmatpush3.bf16.msra.mxu0 %v2102_v39 }
 0xdca   :  { %1960 = vmatprep.subr.bf16.mxu0 %v2597_v3 }
 0xdcd   :  { %1961 = vmatpush3.bf16.msra.mxu0 %v2103_v45 }
 0xdce   :  { %1962 = vmatprep.subr.bf16.mxu0 %v2597_v3 }
 0xdd1   :  { %1963 = vmatpush3.bf16.msra.mxu0 %v2104_v46 }
 0xdd2   :  { %1964 = vmatprep.subr.bf16.mxu0 %v2597_v3 }
 0xdd5   :  { %1965 = vmatpush3.bf16.msra.mxu0 %v2105_v47 }
 0xdd6   :  { %1966 = vmatprep.subr.bf16.mxu0 %v2597_v3 }
 0xdd9   :  { %1967 = vmatpush3.bf16.msra.mxu0 %v2106_v48 }
 0xdda   :  { %1968 = vmatprep.subr.bf16.mxu0 %v2597_v3 }
 0xddd   :  { %1969 = vmatpush3.bf16.msra.mxu0 %v2107_v49 }
 0xe93   :  { %v1200_v4 = vpop.f32.mrb[12].mxu0 }
 0xe94   :  { %v1201_v7 = vadd.f32 %v1697_v2, %v1200_v4  ;;  %v1932_v8 = vpop.f32.mrb[13].mxu0 }
 0xe95   :  { %v1203_v9 = vpop.f32.mrb[14].mxu0 }
 0xe96   :  { %v1206_v10 = vmax.f32 %v1201_v7, 0.0  ;;  %v1933_v11 = vpop.f32.mrb[15].mxu0 }
 0xe97   :  { %v2112_v11 = vld [vmem:[#allocation26 + $0x20] sm:$0xff]  }
 0xe98   :  { %1224 = vadd.xlane.f32.xlu0 %v1206_v10 }
 0xf25   :  { %v1225_v15 = vpop.xlane.xlu0 %1224 }
 0xf26   :  { %v1226_v16 = vmul.f32 0.05, %v1225_v15 }
 0xf28   :  { %v1227_v17 = vsub.f32 %v1206_v10, %v1226_v16  ;;  %v2111_v10 = vld [vmem:[#allocation26 + $0x18] sm:$0xff]  }
 0xf2a   :  { %v1228_v5 = vsel %vm687_vm4, %v1227_v17, 0.0 }
 0xf2b   :  { %v1229_v18 = vmul.f32 %v1228_v5, %v1228_v5 }
 0xf2d   :  { %1230 = vadd.xlane.f32.xlu1 %v1229_v18 }
 0xfba   :  { %v1231_v24 = vpop.xlane.xlu1 %1230 }
 0xfbb   :  { %v1232_v25 = vmul.f32 0.05, %v1231_v24 }
 0xfbd   :  { %v1233_v26 = vadd.f32 1e-05, %v1232_v25 }
 0xfbf   :  { %2130 = vrsqrt.f32 %v1233_v26 }
 0xfc9   :  { %v2131_v27 = vpop.eup %2130 }
 0xfca   :  { %v1235_v28 = vmul.f32 %v2131_v27, %v1228_v5 }
 0xfcc   :  { %v1236_v29 = vpack.c.bf16 %v1235_v28, %v1235_v28 }
 0xfce   :  { %1951 = vmatmul.mubr.bf16.vlgmr.msra.gmra.mrb[12].mxu1 %v1236_v29 }
 0xfcf   :  { %1990 = vmatprep.mubr.msk.bf16.mxu1 %vm2598_vm1, %v2597_v3  ;;  %1975 = vmatpush3.bf16.msra.mxu1 %v2108_v63 }
 0xfd0   :  { %1976 = vmatprep.subr.bf16.mxu1 %v2597_v3 }
 0xfd3   :  { %1977 = vmatpush3.bf16.msra.mxu1 %v2109_v0 }
 0xfd4   :  { %1978 = vmatprep.subr.bf16.mxu1 %v2597_v3 }
 0xfd7   :  { %1979 = vmatpush3.bf16.msra.mxu1 %v2110_v1 }
 0xfd8   :  { %1980 = vmatprep.subr.bf16.mxu1 %v2597_v3 }
 0xfdb   :  { %1981 = vmatpush3.bf16.msra.mxu1 %v2111_v10 }
 0xfdc   :  { %1982 = vmatprep.subr.bf16.mxu1 %v2597_v3 }
 0xfdf   :  { %1983 = vmatpush3.bf16.msra.mxu1 %v2112_v11 }
 0xfe0   :  { %1984 = vmatprep.subr.bf16.mxu1 %v2597_v3 }
 0xfe3   :  { %1985 = vmatpush3.bf16.msra.mxu1 %v2113_v12 }
 0xfe4   :  { %1986 = vmatprep.subr.bf16.mxu1 %v2597_v3 }
 0xfe7   :  { %1987 = vmatpush3.bf16.msra.mxu1 %v2114_v13 }
 0xfe8   :  { %1988 = vmatprep.subr.bf16.mxu1 %v2597_v3 }
 0xfeb   :  { %1989 = vmatpush3.bf16.msra.mxu1 %v2115_v14 }
0x10a1   :  { %v1325_v31 = vpop.f32.mrb[12].mxu1 }
0x10a2   :  { %v1326_v32 = vadd.f32 %v1706_v30, %v1325_v31  ;;  %v1952_v33 = vpop.f32.mrb[13].mxu1 }
0x10a3   :  { %v1328_v34 = vpop.f32.mrb[14].mxu1 }
0x10a4   :  { %v1331_v35 = vmax.f32 %v1326_v32, 0.0  ;;  %v1953_v36 = vpop.f32.mrb[15].mxu1 }
0x10a6   :  { %1349 = vadd.xlane.f32.xlu0 %v1331_v35 }
0x1133   :  { %v1350_v40 = vpop.xlane.xlu0 %1349 }
0x1134   :  { %v1351_v41 = vmul.f32 0.041666668, %v1350_v40 }
0x1136   :  { %v1352_v42 = vsub.f32 %v1331_v35, %v1351_v41 }
0x1138   :  { %v1353_v43 = vsel %vm559_vm3, %v1352_v42, 0.0 }
0x1139   :  { %v1354_v44 = vmul.f32 %v1353_v43, %v1353_v43 }
0x113b   :  { %1355 = vadd.xlane.f32.xlu1 %v1354_v44 }
0x11c8   :  { %v1356_v50 = vpop.xlane.xlu1 %1355 }
0x11c9   :  { %v1357_v51 = vmul.f32 0.041666668, %v1356_v50 }
0x11cb   :  { %v1358_v52 = vadd.f32 1e-05, %v1357_v51 }
0x11cd   :  { %2132 = vrsqrt.f32 %v1358_v52 }
0x11d7   :  { %v2133_v53 = vpop.eup %2132 }
0x11d8   :  { %v1360_v54 = vmul.f32 %v2133_v53, %v1353_v43 }
0x11da   :  { %v1361_v55 = vpack.c.bf16 %v1360_v54, %v1360_v54 }
0x11dc   :  { %1971 = vmatmul.mubr.bf16.vlgmr.msra.gmra.mrb[16].mxu0 %v1361_v55 }
0x12af   :  { %v1450_v57 = vpop.f32.mrb[16].mxu0 }
0x12b0   :  { %v1451_v58 = vadd.f32 %v1715_v56, %v1450_v57  ;;  %v1972_v59 = vpop.f32.mrb[17].mxu0 }
0x12b1   :  { %v1453_v60 = vpop.f32.mrb[18].mxu0 }
0x12b2   :  { %v1456_v61 = vmax.f32 %v1451_v58, 0.0  ;;  %v1973_v62 = vpop.f32.mrb[19].mxu0 }
0x12b4   :  { %1474 = vadd.xlane.f32.xlu0 %v1456_v61 }
0x1341   :  { %v1475_v2 = vpop.xlane.xlu0 %1474 }
0x1342   :  { %v1476_v4 = vmul.f32 0.035714287, %v1475_v2 }
0x1344   :  { %v1477_v7 = vsub.f32 %v1456_v61, %v1476_v4 }
0x1346   :  { %v1478_v8 = vsel %vm431_vm2, %v1477_v7, 0.0 }
0x1347   :  { %v1479_v9 = vmul.f32 %v1478_v8, %v1478_v8 }
0x1349   :  { %1480 = vadd.xlane.f32.xlu1 %v1479_v9 }
0x13d6   :  { %v1481_v6 = vpop.xlane.xlu1 %1480 }
0x13d7   :  { %v1482_v15 = vmul.f32 0.035714287, %v1481_v6 }
0x13d9   :  { %v1483_v16 = vadd.f32 1e-05, %v1482_v15 }
0x13db   :  { %2134 = vrsqrt.f32 %v1483_v16 }
0x13e5   :  { %v2135_v17 = vpop.eup %2134 }
0x13e6   :  { %v1485_v5 = vmul.f32 %v2135_v17, %v1478_v8 }
0x13e8   :  { %v1486_v18 = vpack.c.bf16 %v1485_v5, %v1485_v5 }
0x13ea   :  { %1991 = vmatmul.mubr.bf16.vlgmr.msra.gmra.mrb[16].mxu1 %v1486_v18 }
0x13eb   :  { %2500 = shalt.err (!%p2497_p6)
}
0x13ec   :  { %s2501_s25 = scalar_lea.hbm %s3161_s23, 128 }
0x13ed   :  { %p2502_p7 = scmp.ne.s32.totalorder %s3161_s23, %s2501_s25  ;;  %p2505_p8 = scmp.lt.u32.totalorder %s2501_s25, %s3161_s23 }
0x13ef   :  { %p2507_p9 = pnand %p2505_p8, %p2502_p7 }
0x13f1   :  { %2510 = shalt.err (!%p2507_p9)
}
0x13f2   :  { %1605 = dma.vmem_to_hbm [thread:$0]  %s1603_s19, 128, %s3161_s23, [#allocation30]  }
0x13f3   :  { %s2601_s5 = smov [#allocation31]  }
0x13f4   :  { %s1612_s21 = sshll.u32 %s2601_s5, 4  ;;  %s1613_s21 = int_to_ptr.vmem [resolvable:$true] %s1612_s21 }
0x13f5   :  { %s2511_s3 = scalar_lea.vmem %s1613_s21, 128  ;;  %p2516_p11 = scmp.lt.s32.totalorder %s1613_s21, %s1613_s21 }
0x13f6   :  { %p2512_p10 = scmp.ne.s32.totalorder %s1613_s21, %s2511_s3  ;;  %p2517_p12 = scmp.lt.s32.totalorder %s2511_s3, %s2511_s3 }
0x13f8   :  { %p2518_p13 = por %p2517_p12, %p2516_p11 }
0x13fa   :  { %p2519_p0 = pnand %p2518_p13, %p2512_p10 }
0x13fc   :  { %2522 = shalt.err (!%p2519_p0)
}
0x13fd   :  { %s2523_s4 = scalar_lea.hbm %s3162_s24, 128 }
0x13fe   :  { %p2524_p1 = scmp.ne.s32.totalorder %s3162_s24, %s2523_s4  ;;  %p2527_p2 = scmp.lt.u32.totalorder %s2523_s4, %s3162_s24 }
0x1400   :  { %p2529_p3 = pnand %p2527_p2, %p2524_p1 }
0x1402   :  { %2532 = shalt.err (!%p2529_p3)
}
0x1403   :  { %1615 = dma.vmem_to_hbm [thread:$0]  %s1613_s21, 128, %s3162_s24, [#allocation30]   ;;  %v2136_v25 = vld [vmem:[#allocation2] sm:$0xff] }
0x1404   :  { %s3191_s13 = sld [smem:[#allocation52_spill]]  ;;  %s2602_s1 = smov [#allocation28]  }
0x1405   :  { %s1592_s2 = sshll.u32 %s2602_s1, 4  ;;  %s1593_s2 = int_to_ptr.vmem [resolvable:$true] %s1592_s2 }
0x1406   :  { %s2533_s17 = scalar_lea.vmem %s1593_s2, 128  ;;  %p2538_p5 = scmp.lt.s32.totalorder %s1593_s2, %s1593_s2 }
0x1407   :  { %p2534_p4 = scmp.ne.s32.totalorder %s1593_s2, %s2533_s17  ;;  %p2539_p6 = scmp.lt.s32.totalorder %s2533_s17, %s2533_s17 }
0x1409   :  { %p2540_p7 = por %p2539_p6, %p2538_p5 }
0x140a   :  { %v1724_v3 = vld [vmem:[%s3191_s13] ss:$0 sm:$0xff] }
0x140b   :  { %p2541_p8 = pnand %p2540_p7, %p2534_p4 }
0x14bd   :  { %v1575_v19 = vpop.f32.mrb[16].mxu1 }
0x14be   :  { %v1576_v20 = vadd.f32 %v1724_v3, %v1575_v19  ;;  %v1992_v21 = vpop.f32.mrb[17].mxu1 }
0x14bf   :  { %v1578_v22 = vpop.f32.mrb[18].mxu1 }
0x14c0   :  { %v1581_v23 = vmax.f32 %v1576_v20, 0.0  ;;  %v1993_v24 = vpop.f32.mrb[19].mxu1 }
0x14c2   :  { %v1582_v26 = vadd.f32 %v2136_v25, %v1581_v23 }
0x14c4   :  { %1583 = vst [vmem:[#allocation28] sm:$0xff] %v1582_v26 }
0x14c5   :  { %2544 = shalt.err (!%p2541_p8)
}
0x14c6   :  { %s3192_s19 = sld [smem:[#allocation53_spill]] }
0x14cc   :  { %s2545_s7 = scalar_lea.hbm %s3192_s19, 128 }
0x14cd   :  { %p2546_p9 = scmp.ne.s32.totalorder %s3192_s19, %s2545_s7  ;;  %p2549_p10 = scmp.lt.u32.totalorder %s2545_s7, %s3192_s19 }
0x14cf   :  { %p2551_p11 = pnand %p2549_p10, %p2546_p9 }
0x14d1   :  { %2554 = shalt.err (!%p2551_p11)
}
0x14d2   :  { %1595 = dma.vmem_to_hbm [thread:$0]  %s1593_s2, 128, %s3192_s19, [#allocation4]  }
0x14d3   :  { %2573 = dma.done.wait [#allocation4], 128  }
0x14d4   :  { %2574 = vsyncadd [#allocation4], 4294967168 }
0x14d5   :  { %2575 = dma.done.wait [#allocation30], 256  }
0x14d6   :  { %2576 = vsyncadd [#allocation30], 4294967040 }
0x14d7   :  { %1625 = vsyncpa [#allocation3], 1 }
0x14d8   :  { %1626 = vsyncpa [#allocation6], 1 }
0x14d9   :  { %1627 = vsyncpa [#allocation9], 1 }
0x14da   :  { %1628 = vsyncpa [#allocation12], 1 }
0x14db   :  { %1629 = vsyncpa [#allocation15], 1 }
0x14dc   :  { %1630 = vsyncpa [#allocation18], 1 }
0x14dd   :  { %1631 = vsyncpa [#allocation21], 1 }
0x14de   :  { %1632 = vsyncpa [#allocation24], 1 }
0x14df   :  { %1633 = vsyncpa [#allocation27], 1 }
0x14e0   :  { %1634 = vsyncpa [#allocation4], 1 }
0x14e1   :  { %1635 = vsyncpa [#allocation30], 1 }

</bundles_post_ra>
